<compile_context>
chip_gen: v5e
topology: v5e:2x2
jax: 0.10.0
libtpu: 0.0.40
codegen_flags: <defaults>
</compile_context>

<pallas_src>
import functools

import jax
import jax.numpy as jnp
from jax.experimental import pallas as pl
from jax.experimental.pallas import tpu as pltpu


# M_tile: ~512 lanes is the v7x-friendly choice (fits the 64 MiB VMEM budget
# with K=9*dim bf16 patches + double buffering); 256 here so the toy M=512
# still exercises a multi-step grid and the resident-stats accumulation path.
M_TILE_TARGET = 256
VMEM_LIMIT = 32 * 1024 * 1024
BN_EPS = 1e-5


def _pick_tile(m, target=M_TILE_TARGET):
    for t in (target, 256, 128):
        if t <= m and m % t == 0:
            return t
    return m


def _tile_spec(c, mt):
    return pl.BlockSpec((c, mt), lambda m: (0, m))


def _resident_spec(shape):
    return pl.BlockSpec(tuple(shape), lambda m: (0, 0))


def _params(semantics):
    return pltpu.CompilerParams(dimension_semantics=(semantics,),
                                vmem_limit_bytes=VMEM_LIMIT)


# ----------------------------------------------------------------------------
# Kernels
# ----------------------------------------------------------------------------
def _sum_sumsq(y):
    """Per-channel (sum, sum of squares) over the lane axis -> (C, 2), f32."""
    return jnp.concatenate([jnp.sum(y, axis=1, keepdims=True),
                            jnp.sum(y * y, axis=1, keepdims=True)], axis=1)


def _fold_bn(stats, m_total, gamma, beta):
    """Fold training-mode BN into per-channel scale/shift (2 VPU ops/elem).

    One-pass var = E[x^2] - mean^2 with f32 accumulators; clamped at 0 to guard
    cancellation. TODO(synk): switch to Welford for very large M.
    """
    inv_m = 1.0 / m_total
    mean = stats[:, 0:1] * inv_m
    var = jnp.maximum(stats[:, 1:2] * inv_m - mean * mean, 0.0)
    scale = gamma * jax.lax.rsqrt(var + BN_EPS)
    shift = beta - mean * scale
    return scale, shift


def stage1_pass1_kernel(p_ref, wtop_ref, wl2g_ref, wst1_ref,
                        ytop_ref, yl2g_ref, s1raw_ref, statsl_ref, statss_ref,
                        *, cl, cg):
    """3x3 convs (split matmuls, no zero quadrant) + spectral conv1 + stats."""
    @pl.when(pl.program_id(0) == 0)
    def _():
        statsl_ref[...] = jnp.zeros_like(statsl_ref)
        statss_ref[...] = jnp.zeros_like(statss_ref)

    p = p_ref[...]                                       # (9*(cl+cg), Mt) bf16
    # conv_l2l(x_l) + conv_g2l(x_g): one MXU push over the full patch stack.
    y_top = jnp.dot(wtop_ref[...], p, preferred_element_type=jnp.float32)
    # conv_l2g(x_l): contracts only the local-channel taps (no zero block).
    y_l2g = jnp.dot(wl2g_ref[...], p[:9 * cl],
                    preferred_element_type=jnp.float32)
    # SpectralTransform.conv1 (1x1): the center tap (ky=kx=1) of the reflect-
    # padded global patch rows IS the unpadded x_g (padding=1, stride=1), so
    # slice it out of p instead of DMA-ing x_g a second time.
    xg = p[9 * cl + 4 * cg: 9 * cl + 5 * cg]
    s1 = jnp.dot(wst1_ref[...], xg, preferred_element_type=jnp.float32)

    ytop_ref[...] = y_top
    yl2g_ref[...] = y_l2g.astype(yl2g_ref.dtype)
    s1raw_ref[...] = s1
    statsl_ref[...] += _sum_sumsq(y_top)
    statss_ref[...] += _sum_sumsq(s1)


def stage1_pass2_kernel(*refs, m_total, add_residual):
    """Folded BN_l + ReLU (+residual) and spectral conv1 BN + ReLU."""
    if add_residual:
        (ytop_ref, s1raw_ref, statsl_ref, statss_ref,
         bnl_g, bnl_b, st1_g, st1_b, idl_ref, outl_ref, s1act_ref) = refs
    else:
        (ytop_ref, s1raw_ref, statsl_ref, statss_ref,
         bnl_g, bnl_b, st1_g, st1_b, outl_ref, s1act_ref) = refs
        idl_ref = None

    scale_l, shift_l = _fold_bn(statsl_ref[...], m_total, bnl_g[...], bnl_b[...])
    scale_s, shift_s = _fold_bn(statss_ref[...], m_total, st1_g[...], st1_b[...])

    out_l = jnp.maximum(ytop_ref[...] * scale_l + shift_l, 0.0)
    if add_residual:
        out_l = out_l + idl_ref[...]
    outl_ref[...] = out_l
    s1act_ref[...] = jnp.maximum(s1raw_ref[...] * scale_s + shift_s,
                                 0.0).astype(s1act_ref.dtype)


def conv1x1_stats_kernel(x_ref, w_ref, y_ref, stats_ref):
    """FourierUnit 1x1 conv on block-layout real/imag channels + stats."""
    @pl.when(pl.program_id(0) == 0)
    def _():
        stats_ref[...] = jnp.zeros_like(stats_ref)
    y = jnp.dot(w_ref[...], x_ref[...], preferred_element_type=jnp.float32)
    y_ref[...] = y
    stats_ref[...] += _sum_sumsq(y)


def stage2_pass1_kernel(s1_ref, fu_ref, yl2g_ref, wst2_ref, yg_ref, stats_ref):
    """y_l2g + SpectralTransform.conv2(s1 + fu) + stats for BN_g."""
    @pl.when(pl.program_id(0) == 0)
    def _():
        stats_ref[...] = jnp.zeros_like(stats_ref)
    z = s1_ref[...] + fu_ref[...]                                    # bf16
    yg = yl2g_ref[...].astype(jnp.float32) + jnp.dot(
        wst2_ref[...], z, preferred_element_type=jnp.float32)
    yg_ref[...] = yg
    stats_ref[...] += _sum_sumsq(yg)


def bn_relu_apply_kernel(*refs, m_total, add_residual):
    """Generic pass 2: folded BN scale/shift + ReLU (+residual)."""
    if add_residual:
        y_ref, stats_ref, g_ref, b_ref, id_ref, out_ref = refs
    else:
        y_ref, stats_ref, g_ref, b_ref, out_ref = refs
        id_ref = None
    scale, shift = _fold_bn(stats_ref[...], m_total, g_ref[...], b_ref[...])
    out = jnp.maximum(y_ref[...] * scale + shift, 0.0)
    if add_residual:
        out = out + id_ref[...]
    out_ref[...] = out.astype(out_ref.dtype)


# ----------------------------------------------------------------------------
# pallas_call wrappers (M-tiled grids; weights / stats are resident blocks)
# ----------------------------------------------------------------------------
def stage1_pass1(p_all, w_top, w_l2g, w_st1, mt):
    k1, m_ = p_all.shape
    cl, cg, c2 = w_top.shape[0], w_l2g.shape[0], w_st1.shape[0]
    return pl.pallas_call(
        functools.partial(stage1_pass1_kernel, cl=cl, cg=cg),
        grid=(m_ // mt,),
        in_specs=[_tile_spec(k1, mt), _resident_spec(w_top.shape),
                  _resident_spec(w_l2g.shape), _resident_spec(w_st1.shape)],
        out_specs=(_tile_spec(cl, mt), _tile_spec(cg, mt), _tile_spec(c2, mt),
                   _resident_spec((cl, 2)), _resident_spec((c2, 2))),
        out_shape=(jax.ShapeDtypeStruct((cl, m_), jnp.float32),
                   jax.ShapeDtypeStruct((cg, m_), jnp.bfloat16),
                   jax.ShapeDtypeStruct((c2, m_), jnp.float32),
                   jax.ShapeDtypeStruct((cl, 2), jnp.float32),
                   jax.ShapeDtypeStruct((c2, 2), jnp.float32)),
        compiler_params=_params("arbitrary"),
    )(p_all, w_top, w_l2g, w_st1)


def stage1_pass2(y_top, s1_raw, stats_l, stats_s,
                 bnl_g, bnl_b, st1_g, st1_b, mt, idl=None):
    cl, m_ = y_top.shape
    c2 = s1_raw.shape[0]
    inputs = [y_top, s1_raw, stats_l, stats_s, bnl_g, bnl_b, st1_g, st1_b]
    in_specs = [_tile_spec(cl, mt), _tile_spec(c2, mt),
                _resident_spec(stats_l.shape), _resident_spec(stats_s.shape),
                _resident_spec(bnl_g.shape), _resident_spec(bnl_b.shape),
                _resident_spec(st1_g.shape), _resident_spec(st1_b.shape)]
    if idl is not None:
        inputs.append(idl)
        in_specs.append(_tile_spec(cl, mt))
    return pl.pallas_call(
        functools.partial(stage1_pass2_kernel, m_total=float(m_),
                          add_residual=idl is not None),
        grid=(m_ // mt,),
        in_specs=in_specs,
        out_specs=(_tile_spec(cl, mt), _tile_spec(c2, mt)),
        out_shape=(jax.ShapeDtypeStruct((cl, m_), jnp.float32),
                   jax.ShapeDtypeStruct((c2, m_), jnp.bfloat16)),
        compiler_params=_params("parallel"),
    )(*inputs)


def conv1x1_stats(x, w, mt):
    cin, m_ = x.shape
    cout = w.shape[0]
    return pl.pallas_call(
        conv1x1_stats_kernel,
        grid=(m_ // mt,),
        in_specs=[_tile_spec(cin, mt), _resident_spec(w.shape)],
        out_specs=(_tile_spec(cout, mt), _resident_spec((cout, 2))),
        out_shape=(jax.ShapeDtypeStruct((cout, m_), jnp.float32),
                   jax.ShapeDtypeStruct((cout, 2), jnp.float32)),
        compiler_params=_params("arbitrary"),
    )(x, w)


def stage2_pass1(s1_act, fu, y_l2g, w_st2, mt):
    c2, m_ = s1_act.shape
    cg = w_st2.shape[0]
    return pl.pallas_call(
        stage2_pass1_kernel,
        grid=(m_ // mt,),
        in_specs=[_tile_spec(c2, mt), _tile_spec(c2, mt), _tile_spec(cg, mt),
                  _resident_spec(w_st2.shape)],
        out_specs=(_tile_spec(cg, mt), _resident_spec((cg, 2))),
        out_shape=(jax.ShapeDtypeStruct((cg, m_), jnp.float32),
                   jax.ShapeDtypeStruct((cg, 2), jnp.float32)),
        compiler_params=_params("arbitrary"),
    )(s1_act, fu, y_l2g, w_st2)


def bn_relu_apply(y, stats, gamma, beta, mt, out_dtype, ident=None):
    c, m_ = y.shape
    inputs = [y, stats, gamma, beta]
    in_specs = [_tile_spec(c, mt), _resident_spec(stats.shape),
                _resident_spec(gamma.shape), _resident_spec(beta.shape)]
    if ident is not None:
        inputs.append(ident)
        in_specs.append(_tile_spec(c, mt))
    return pl.pallas_call(
        functools.partial(bn_relu_apply_kernel, m_total=float(m_),
                          add_residual=ident is not None),
        grid=(m_ // mt,),
        in_specs=in_specs,
        out_specs=_tile_spec(c, mt),
        out_shape=jax.ShapeDtypeStruct((c, m_), out_dtype),
        compiler_params=_params("parallel"),
    )(*inputs)


# ----------------------------------------------------------------------------
# Model glue (im2col, FFT, layer wiring)
# ----------------------------------------------------------------------------
def im2col_reflect(x2d, n, h, w):
    """(C, M) -> (9*C, M) im2col patches of a 3x3 reflect-padded conv.

    Row order: tap-major (ky*3+kx), channel-minor within each tap.
    TODO(synk): move reflect halo + patch extraction in-kernel (9 accumulated
    dots over halo'd spatial tiles) at production sizes; XLA glue here.
    """
    c = x2d.shape[0]
    x4 = x2d.reshape(c, n, h, w)
    xp = jnp.pad(x4, ((0, 0), (0, 0), (1, 1), (1, 1)), mode='reflect')
    taps = [xp[:, :, ky:ky + h, kx:kx + w].reshape(c, n * h * w)
            for ky in range(3) for kx in range(3)]
    return jnp.concatenate(taps, axis=0)


def ffc_bn_act(xl2d, xg2d, p, n, h, w, idl=None, idg=None):
    """One FFC_BN_ACT layer (ratio_gin=ratio_gout=0.5); residual adds fused."""
    m = n * h * w
    mt = _pick_tile(m)
    p_l = im2col_reflect(xl2d, n, h, w)                   # (9*cl, M)
    p_g = im2col_reflect(xg2d, n, h, w)                   # (9*cg, M)
    p_all = jnp.concatenate([p_l, p_g], axis=0).astype(jnp.bfloat16)

    y_top, y_l2g, s1_raw, stats_l, stats_s = stage1_pass1(
        p_all, p['w_top'], p['w_l2g'], p['w_st1'], mt)
    out_l, s1_act = stage1_pass2(
        y_top, s1_raw, stats_l, stats_s,
        p['bnl_gamma'], p['bnl_beta'], p['st1_gamma'], p['st1_beta'], mt, idl)

    # FourierUnit: rfft2 -> 1x1 conv + BN + ReLU (Pallas) -> irfft2.
    # TODO(synk): 2-D rfft/irfft has no Pallas primitive; jnp.fft (XLA) glue.
    c2 = s1_act.shape[0]
    ff = jnp.fft.rfft2(s1_act.astype(jnp.float32).reshape(c2, n, h, w),
                       axes=(2, 3), norm='ortho')
    w2 = ff.shape[-1]
    m2 = n * h * w2
    # Block (non-interleaved) real/imag channel layout; w_fu and the FU BN
    # params are generated directly in the matching permuted layout, so no
    # stack/reshape relayout of the spectral features is needed.
    feat = jnp.concatenate([ff.real.reshape(c2, m2), ff.imag.reshape(c2, m2)],
                           axis=0).astype(jnp.bfloat16)
    mt2 = _pick_tile(m2)
    fy_raw, fstats = conv1x1_stats(feat, p['w_fu'], mt2)
    fy = bn_relu_apply(fy_raw, fstats, p['fu_gamma'], p['fu_beta'],
                       mt2, jnp.float32)
    fc = jax.lax.complex(fy[:c2].reshape(c2, n, h, w2),
                         fy[c2:].reshape(c2, n, h, w2))
    fu = jnp.fft.irfft2(fc, s=(h, w), axes=(2, 3),
                        norm='ortho').reshape(c2, m).astype(jnp.bfloat16)

    yg_raw, gstats = stage2_pass1(s1_act, fu, y_l2g, p['w_st2'], mt)
    out_g = bn_relu_apply(yg_raw, gstats, p['bng_gamma'], p['bng_beta'],
                          mt, jnp.float32, idg)
    return out_l, out_g


def ffc_resnet_block_cm(xl2d, xg2d, p1, p2, n, h, w):
    """FFCResnetBlock on (C, M) activations — stack these without relayout."""
    yl, yg = ffc_bn_act(xl2d, xg2d, p1, n, h, w)                     # conv1
    ol, og = ffc_bn_act(yl, yg, p2, n, h, w, idl=xl2d, idg=xg2d)     # conv2 + res
    return ol, og


def ffc_resnet_block(x_l, x_g, p1, p2):
    """NCHW boundary wrapper (inline=False, outline=False, tuple input)."""
    n, cl, h, w = x_l.shape
    cg = x_g.shape[1]
    m = n * h * w
    xl2d = jnp.transpose(x_l, (1, 0, 2, 3)).reshape(cl, m)
    xg2d = jnp.transpose(x_g, (1, 0, 2, 3)).reshape(cg, m)
    ol, og = ffc_resnet_block_cm(xl2d, xg2d, p1, p2, n, h, w)
    out_l = jnp.transpose(ol.reshape(cl, n, h, w), (1, 0, 2, 3))
    out_g = jnp.transpose(og.reshape(cg, n, h, w), (1, 0, 2, 3))
    return out_l, out_g


# ----------------------------------------------------------------------------
# Deterministic synthetic parameters
# ----------------------------------------------------------------------------
def _bn_params(key, c):
    k1, k2 = jax.random.split(key)
    gamma = jax.random.uniform(k1, (c, 1), jnp.float32, 0.5, 1.5)
    beta = 0.1 * jax.random.normal(k2, (c, 1), jnp.float32)
    return gamma, beta


def make_ffc_params(key, cl, cg):
    keys = jax.random.split(key, 10)
    c2 = cg // 2
    p = {}
    # 3x3 conv weights in (Cout, 9*Cin) im2col layout (tap-major, chan-minor).
    w_l2l = 0.1 * jax.random.normal(keys[0], (cl, 9 * cl), jnp.float32)
    w_g2l = 0.1 * jax.random.normal(keys[1], (cl, 9 * cg), jnp.float32)
    w_l2g = 0.1 * jax.random.normal(keys[2], (cg, 9 * cl), jnp.float32)
    p['w_top'] = jnp.concatenate([w_l2l, w_g2l], axis=1).astype(jnp.bfloat16)
    p['w_l2g'] = w_l2g.astype(jnp.bfloat16)
    # SpectralTransform / FourierUnit 1x1 conv weights (Cout, Cin).
    p['w_st1'] = (0.1 * jax.random.normal(keys[3], (c2, cg), jnp.float32)
                  ).astype(jnp.bfloat16)
    p['st1_gamma'], p['st1_beta'] = _bn_params(keys[4], c2)
    # FourierUnit weight / BN in block real/imag layout (permutation of the
    # PyTorch interleaved layout, absorbed here at construction time).
    p['w_fu'] = (0.1 * jax.random.normal(keys[5], (2 * c2, 2 * c2), jnp.float32)
                 ).astype(jnp.bfloat16)
    p['fu_gamma'], p['fu_beta'] = _bn_params(keys[6], 2 * c2)
    p['w_st2'] = (0.1 * jax.random.normal(keys[7], (cg, c2), jnp.float32)
                  ).astype(jnp.bfloat16)
    p['bnl_gamma'], p['bnl_beta'] = _bn_params(keys[8], cl)
    p['bng_gamma'], p['bng_beta'] = _bn_params(keys[9], cg)
    return p


if __name__ == "__main__":
    key = jax.random.PRNGKey(0)
    k_xl, k_xg, k_p1, k_p2 = jax.random.split(key, 4)

    # dim=8, ratio_gin=ratio_gout=0.5 -> 4 local + 4 global channels (NCHW).
    N, H, W = 2, 16, 16
    dim, ratio = 8, 0.5
    cg = int(dim * ratio)
    cl = dim - cg

    x_l = jax.random.normal(k_xl, (N, cl, H, W), jnp.float32)
    x_g = jax.random.normal(k_xg, (N, cg, H, W), jnp.float32)

    p1 = make_ffc_params(k_p1, cl, cg)
    p2 = make_ffc_params(k_p2, cl, cg)

    out_l, out_g = jax.jit(ffc_resnet_block)(x_l, x_g, p1, p2)
    jax.block_until_ready((out_l, out_g))
    assert out_l.shape == (N, cl, H, W) and out_g.shape == (N, cg, H, W)
    assert bool(jnp.all(jnp.isfinite(out_l))) and bool(jnp.all(jnp.isfinite(out_g)))
    print("KERNEL_OK")
</pallas_src>

<mosaic_0001>
module attributes {stable_mosaic.version = 11 : i64} {
  func.func @stage1_pass1_kernel(%arg0: i32, %arg1: memref<72x256xbf16, #tpu.memory_space<vmem>>, %arg2: memref<4x72xbf16, #tpu.memory_space<vmem>>, %arg3: memref<4x36xbf16, #tpu.memory_space<vmem>>, %arg4: memref<2x4xbf16, #tpu.memory_space<vmem>>, %arg5: memref<4x256xf32, #tpu.memory_space<vmem>>, %arg6: memref<4x256xbf16, #tpu.memory_space<vmem>>, %arg7: memref<2x256xf32, #tpu.memory_space<vmem>>, %arg8: memref<4x2xf32, #tpu.memory_space<vmem>>, %arg9: memref<2x2xf32, #tpu.memory_space<vmem>>) attributes {dimension_semantics = [#tpu.dimension_semantics<arbitrary>], iteration_bounds = array<i64: 2>, scalar_prefetch = 0 : i64, scratch_operands = 0 : i64, tpu.core_type = #tpu.core_type<tc>, window_params = [{transform_indices = @transform_0, window_bounds = array<i64: 72, 256>}, {pipeline_mode = #tpu.pipeline_mode<synchronous>, transform_indices = @transform_1, window_bounds = array<i64: 4, 72>}, {pipeline_mode = #tpu.pipeline_mode<synchronous>, transform_indices = @transform_2, window_bounds = array<i64: 4, 36>}, {pipeline_mode = #tpu.pipeline_mode<synchronous>, transform_indices = @transform_3, window_bounds = array<i64: 2, 4>}, {transform_indices = @transform_4, window_bounds = array<i64: 4, 256>}, {transform_indices = @transform_5, window_bounds = array<i64: 4, 256>}, {transform_indices = @transform_6, window_bounds = array<i64: 2, 256>}, {pipeline_mode = #tpu.pipeline_mode<synchronous>, transform_indices = @transform_7, window_bounds = array<i64: 4, 2>}, {pipeline_mode = #tpu.pipeline_mode<synchronous>, transform_indices = @transform_8, window_bounds = array<i64: 2, 2>}]} {
    %c0_i32 = arith.constant 0 : i32
    %0 = arith.cmpi eq, %arg0, %c0_i32 : i32
    %1 = arith.extui %0 : i1 to i32
    %c0_i32_0 = arith.constant 0 : i32
    %2 = arith.cmpi ne, %1, %c0_i32_0 : i32
    scf.if %2 {
      %cst_28 = arith.constant 0.000000e+00 : f32
      %34 = vector.broadcast %cst_28 : f32 to vector<4x2xf32>
      %c0_29 = arith.constant 0 : index
      %c0_30 = arith.constant 0 : index
      %35 = vector.load %arg8[%c0_29, %c0_30] : memref<4x2xf32, #tpu.memory_space<vmem>>, vector<4x2xf32>
      tpu.vector_store %arg8[%c0_29, %c0_30], %34 {strides = array<i32>} : memref<4x2xf32, #tpu.memory_space<vmem>>, vector<4x2xf32>,
      %cst_31 = arith.constant 0.000000e+00 : f32
      %36 = vector.broadcast %cst_31 : f32 to vector<2x2xf32>
      %c0_32 = arith.constant 0 : index
      %c0_33 = arith.constant 0 : index
      %37 = vector.load %arg9[%c0_32, %c0_33] : memref<2x2xf32, #tpu.memory_space<vmem>>, vector<2x2xf32>
      tpu.vector_store %arg9[%c0_32, %c0_33], %36 {strides = array<i32>} : memref<2x2xf32, #tpu.memory_space<vmem>>, vector<2x2xf32>,
    } else {
    }
    %c0 = arith.constant 0 : index
    %c0_1 = arith.constant 0 : index
    %3 = vector.load %arg1[%c0, %c0_1] : memref<72x256xbf16, #tpu.memory_space<vmem>>, vector<72x256xbf16>
    %c0_2 = arith.constant 0 : index
    %c0_3 = arith.constant 0 : index
    %4 = vector.load %arg2[%c0_2, %c0_3] : memref<4x72xbf16, #tpu.memory_space<vmem>>, vector<4x72xbf16>
    %cst = arith.constant dense<0.000000e+00> : vector<4x256xf32>
    %5 = tpu.matmul %4, %3, %cst {dimension_numbers = #tpu.dot_dimension_numbers<[1], [0], [0], [1], [0, 0, 1, 1], [], []>} : vector<4x72xbf16>, vector<72x256xbf16>, vector<4x256xf32> -> vector<4x256xf32>
    %c0_4 = arith.constant 0 : index
    %c0_5 = arith.constant 0 : index
    %6 = vector.load %arg3[%c0_4, %c0_5] : memref<4x36xbf16, #tpu.memory_space<vmem>>, vector<4x36xbf16>
    %7 = vector.extract_strided_slice %3 {offsets = [0, 0], sizes = [36, 256], strides = [1, 1]} : vector<72x256xbf16> to vector<36x256xbf16>
    %cst_6 = arith.constant dense<0.000000e+00> : vector<4x256xf32>
    %8 = tpu.matmul %6, %7, %cst_6 {dimension_numbers = #tpu.dot_dimension_numbers<[1], [0], [0], [1], [0, 0, 1, 1], [], []>} : vector<4x36xbf16>, vector<36x256xbf16>, vector<4x256xf32> -> vector<4x256xf32>
    %9 = vector.extract_strided_slice %3 {offsets = [52, 0], sizes = [4, 256], strides = [1, 1]} : vector<72x256xbf16> to vector<4x256xbf16>
    %c0_7 = arith.constant 0 : index
    %c0_8 = arith.constant 0 : index
    %10 = vector.load %arg4[%c0_7, %c0_8] : memref<2x4xbf16, #tpu.memory_space<vmem>>, vector<2x4xbf16>
    %cst_9 = arith.constant dense<0.000000e+00> : vector<2x256xf32>
    %11 = tpu.matmul %10, %9, %cst_9 {dimension_numbers = #tpu.dot_dimension_numbers<[1], [0], [0], [1], [0, 0, 1, 1], [], []>} : vector<2x4xbf16>, vector<4x256xbf16>, vector<2x256xf32> -> vector<2x256xf32>
    %c0_10 = arith.constant 0 : index
    %c0_11 = arith.constant 0 : index
    %12 = vector.load %arg5[%c0_10, %c0_11] : memref<4x256xf32, #tpu.memory_space<vmem>>, vector<4x256xf32>
    tpu.vector_store %arg5[%c0_10, %c0_11], %5 {strides = array<i32>} : memref<4x256xf32, #tpu.memory_space<vmem>>, vector<4x256xf32>,
    %13 = arith.truncf %8 : vector<4x256xf32> to vector<4x256xbf16>
    %c0_12 = arith.constant 0 : index
    %c0_13 = arith.constant 0 : index
    %14 = vector.load %arg6[%c0_12, %c0_13] : memref<4x256xbf16, #tpu.memory_space<vmem>>, vector<4x256xbf16>
    tpu.vector_store %arg6[%c0_12, %c0_13], %13 {strides = array<i32>} : memref<4x256xbf16, #tpu.memory_space<vmem>>, vector<4x256xbf16>,
    %c0_14 = arith.constant 0 : index
    %c0_15 = arith.constant 0 : index
    %15 = vector.load %arg7[%c0_14, %c0_15] : memref<2x256xf32, #tpu.memory_space<vmem>>, vector<2x256xf32>
    tpu.vector_store %arg7[%c0_14, %c0_15], %11 {strides = array<i32>} : memref<2x256xf32, #tpu.memory_space<vmem>>, vector<2x256xf32>,
    %c0_16 = arith.constant 0 : index
    %c0_17 = arith.constant 0 : index
    %16 = vector.load %arg8[%c0_16, %c0_17] : memref<4x2xf32, #tpu.memory_space<vmem>>, vector<4x2xf32>
    %cst_18 = arith.constant dense<0.000000e+00> : vector<4xf32>
    %17 = vector.multi_reduction <add>, %5, %cst_18 [1] : vector<4x256xf32> to vector<4xf32>
    %18 = vector.shape_cast %17 : vector<4xf32> to vector<4x1xf32>
    %19 = arith.mulf %5, %5 : vector<4x256xf32>
    %cst_19 = arith.constant dense<0.000000e+00> : vector<4xf32>
    %20 = vector.multi_reduction <add>, %19, %cst_19 [1] : vector<4x256xf32> to vector<4xf32>
    %21 = vector.shape_cast %20 : vector<4xf32> to vector<4x1xf32>
    %22 = tpu.concatenate %18, %21 in 1 : vector<4x1xf32>, vector<4x1xf32> -> vector<4x2xf32>
    %23 = arith.addf %16, %22 : vector<4x2xf32>
    %c0_20 = arith.constant 0 : index
    %c0_21 = arith.constant 0 : index
    %24 = vector.load %arg8[%c0_20, %c0_21] : memref<4x2xf32, #tpu.memory_space<vmem>>, vector<4x2xf32>
    tpu.vector_store %arg8[%c0_20, %c0_21], %23 {strides = array<i32>} : memref<4x2xf32, #tpu.memory_space<vmem>>, vector<4x2xf32>,
    %c0_22 = arith.constant 0 : index
    %c0_23 = arith.constant 0 : index
    %25 = vector.load %arg9[%c0_22, %c0_23] : memref<2x2xf32, #tpu.memory_space<vmem>>, vector<2x2xf32>
    %cst_24 = arith.constant dense<0.000000e+00> : vector<2xf32>
    %26 = vector.multi_reduction <add>, %11, %cst_24 [1] : vector<2x256xf32> to vector<2xf32>
    %27 = vector.shape_cast %26 : vector<2xf32> to vector<2x1xf32>
    %28 = arith.mulf %11, %11 : vector<2x256xf32>
    %cst_25 = arith.constant dense<0.000000e+00> : vector<2xf32>
    %29 = vector.multi_reduction <add>, %28, %cst_25 [1] : vector<2x256xf32> to vector<2xf32>
    %30 = vector.shape_cast %29 : vector<2xf32> to vector<2x1xf32>
    %31 = tpu.concatenate %27, %30 in 1 : vector<2x1xf32>, vector<2x1xf32> -> vector<2x2xf32>
    %32 = arith.addf %25, %31 : vector<2x2xf32>
    %c0_26 = arith.constant 0 : index
    %c0_27 = arith.constant 0 : index
    %33 = vector.load %arg9[%c0_26, %c0_27] : memref<2x2xf32, #tpu.memory_space<vmem>>, vector<2x2xf32>
    tpu.vector_store %arg9[%c0_26, %c0_27], %32 {strides = array<i32>} : memref<2x2xf32, #tpu.memory_space<vmem>>, vector<2x2xf32>,
    return
  }
  func.func @transform_0(%arg0: i32) -> (i32, i32) {
    %c0_i32 = arith.constant 0 : i32
    %c0_i32_0 = arith.constant 0 : i32
    return %c0_i32, %arg0 : i32, i32
  }
  func.func @transform_1(%arg0: i32) -> (i32, i32) {
    %c0_i32 = arith.constant 0 : i32
    %c0_i32_0 = arith.constant 0 : i32
    %c0_i32_1 = arith.constant 0 : i32
    return %c0_i32, %c0_i32_0 : i32, i32
  }
  func.func @transform_2(%arg0: i32) -> (i32, i32) {
    %c0_i32 = arith.constant 0 : i32
    %c0_i32_0 = arith.constant 0 : i32
    %c0_i32_1 = arith.constant 0 : i32
    return %c0_i32, %c0_i32_0 : i32, i32
  }
  func.func @transform_3(%arg0: i32) -> (i32, i32) {
    %c0_i32 = arith.constant 0 : i32
    %c0_i32_0 = arith.constant 0 : i32
    %c0_i32_1 = arith.constant 0 : i32
    return %c0_i32, %c0_i32_0 : i32, i32
  }
  func.func @transform_4(%arg0: i32) -> (i32, i32) {
    %c0_i32 = arith.constant 0 : i32
    %c0_i32_0 = arith.constant 0 : i32
    return %c0_i32, %arg0 : i32, i32
  }
  func.func @transform_5(%arg0: i32) -> (i32, i32) {
    %c0_i32 = arith.constant 0 : i32
    %c0_i32_0 = arith.constant 0 : i32
    return %c0_i32, %arg0 : i32, i32
  }
  func.func @transform_6(%arg0: i32) -> (i32, i32) {
    %c0_i32 = arith.constant 0 : i32
    %c0_i32_0 = arith.constant 0 : i32
    return %c0_i32, %arg0 : i32, i32
  }
  func.func @transform_7(%arg0: i32) -> (i32, i32) {
    %c0_i32 = arith.constant 0 : i32
    %c0_i32_0 = arith.constant 0 : i32
    %c0_i32_1 = arith.constant 0 : i32
    return %c0_i32, %c0_i32_0 : i32, i32
  }
  func.func @transform_8(%arg0: i32) -> (i32, i32) {
    %c0_i32 = arith.constant 0 : i32
    %c0_i32_0 = arith.constant 0 : i32
    %c0_i32_1 = arith.constant 0 : i32
    return %c0_i32, %c0_i32_0 : i32, i32
  }
}

module attributes {stable_mosaic.version = 11 : i64} {
  func.func @stage1_pass2_kernel(%arg0: i32, %arg1: memref<4x256xf32, #tpu.memory_space<vmem>>, %arg2: memref<2x256xf32, #tpu.memory_space<vmem>>, %arg3: memref<4x2xf32, #tpu.memory_space<vmem>>, %arg4: memref<2x2xf32, #tpu.memory_space<vmem>>, %arg5: memref<4x1xf32, #tpu.memory_space<vmem>>, %arg6: memref<4x1xf32, #tpu.memory_space<vmem>>, %arg7: memref<2x1xf32, #tpu.memory_space<vmem>>, %arg8: memref<2x1xf32, #tpu.memory_space<vmem>>, %arg9: memref<4x256xf32, #tpu.memory_space<vmem>>, %arg10: memref<2x256xbf16, #tpu.memory_space<vmem>>) attributes {dimension_semantics = [#tpu.dimension_semantics<parallel>], iteration_bounds = array<i64: 2>, scalar_prefetch = 0 : i64, scratch_operands = 0 : i64, tpu.core_type = #tpu.core_type<tc>, window_params = [{transform_indices = @transform_0, window_bounds = array<i64: 4, 256>}, {transform_indices = @transform_1, window_bounds = array<i64: 2, 256>}, {pipeline_mode = #tpu.pipeline_mode<synchronous>, transform_indices = @transform_2, window_bounds = array<i64: 4, 2>}, {pipeline_mode = #tpu.pipeline_mode<synchronous>, transform_indices = @transform_3, window_bounds = array<i64: 2, 2>}, {pipeline_mode = #tpu.pipeline_mode<synchronous>, transform_indices = @transform_4, window_bounds = array<i64: 4, 1>}, {pipeline_mode = #tpu.pipeline_mode<synchronous>, transform_indices = @transform_5, window_bounds = array<i64: 4, 1>}, {pipeline_mode = #tpu.pipeline_mode<synchronous>, transform_indices = @transform_6, window_bounds = array<i64: 2, 1>}, {pipeline_mode = #tpu.pipeline_mode<synchronous>, transform_indices = @transform_7, window_bounds = array<i64: 2, 1>}, {transform_indices = @transform_8, window_bounds = array<i64: 4, 256>}, {transform_indices = @transform_9, window_bounds = array<i64: 2, 256>}]} {
    %c0 = arith.constant 0 : index
    %c0_0 = arith.constant 0 : index
    %0 = vector.load %arg3[%c0, %c0_0] : memref<4x2xf32, #tpu.memory_space<vmem>>, vector<4x2xf32>
    %c0_1 = arith.constant 0 : index
    %c0_2 = arith.constant 0 : index
    %1 = vector.load %arg5[%c0_1, %c0_2] : memref<4x1xf32, #tpu.memory_space<vmem>>, vector<4x1xf32>
    %c0_3 = arith.constant 0 : index
    %c0_4 = arith.constant 0 : index
    %2 = vector.load %arg6[%c0_3, %c0_4] : memref<4x1xf32, #tpu.memory_space<vmem>>, vector<4x1xf32>
    %3 = vector.extract_strided_slice %0 {offsets = [0, 0], sizes = [4, 1], strides = [1, 1]} : vector<4x2xf32> to vector<4x1xf32>
    %cst = arith.constant 0.001953125 : f32
    %4 = vector.broadcast %cst : f32 to vector<4x1xf32>
    %5 = arith.mulf %3, %4 : vector<4x1xf32>
    %6 = vector.extract_strided_slice %0 {offsets = [0, 1], sizes = [4, 1], strides = [1, 1]} : vector<4x2xf32> to vector<4x1xf32>
    %cst_5 = arith.constant 0.001953125 : f32
    %7 = vector.broadcast %cst_5 : f32 to vector<4x1xf32>
    %8 = arith.mulf %6, %7 : vector<4x1xf32>
    %9 = arith.mulf %5, %5 : vector<4x1xf32>
    %10 = arith.subf %8, %9 : vector<4x1xf32>
    %cst_6 = arith.constant 0.000000e+00 : f32
    %11 = vector.broadcast %cst_6 : f32 to vector<4x1xf32>
    %12 = arith.maximumf %10, %11 : vector<4x1xf32>
    %cst_7 = arith.constant 9.99999974E-6 : f32
    %13 = vector.broadcast %cst_7 : f32 to vector<4x1xf32>
    %14 = arith.addf %12, %13 : vector<4x1xf32>
    %15 = math.rsqrt %14 : vector<4x1xf32>
    %16 = arith.mulf %1, %15 : vector<4x1xf32>
    %17 = arith.mulf %5, %16 : vector<4x1xf32>
    %18 = arith.subf %2, %17 : vector<4x1xf32>
    %c0_8 = arith.constant 0 : index
    %c0_9 = arith.constant 0 : index
    %19 = vector.load %arg4[%c0_8, %c0_9] : memref<2x2xf32, #tpu.memory_space<vmem>>, vector<2x2xf32>
    %c0_10 = arith.constant 0 : index
    %c0_11 = arith.constant 0 : index
    %20 = vector.load %arg7[%c0_10, %c0_11] : memref<2x1xf32, #tpu.memory_space<vmem>>, vector<2x1xf32>
    %c0_12 = arith.constant 0 : index
    %c0_13 = arith.constant 0 : index
    %21 = vector.load %arg8[%c0_12, %c0_13] : memref<2x1xf32, #tpu.memory_space<vmem>>, vector<2x1xf32>
    %22 = vector.extract_strided_slice %19 {offsets = [0, 0], sizes = [2, 1], strides = [1, 1]} : vector<2x2xf32> to vector<2x1xf32>
    %cst_14 = arith.constant 0.001953125 : f32
    %23 = vector.broadcast %cst_14 : f32 to vector<2x1xf32>
    %24 = arith.mulf %22, %23 : vector<2x1xf32>
    %25 = vector.extract_strided_slice %19 {offsets = [0, 1], sizes = [2, 1], strides = [1, 1]} : vector<2x2xf32> to vector<2x1xf32>
    %cst_15 = arith.constant 0.001953125 : f32
    %26 = vector.broadcast %cst_15 : f32 to vector<2x1xf32>
    %27 = arith.mulf %25, %26 : vector<2x1xf32>
    %28 = arith.mulf %24, %24 : vector<2x1xf32>
    %29 = arith.subf %27, %28 : vector<2x1xf32>
    %cst_16 = arith.constant 0.000000e+00 : f32
    %30 = vector.broadcast %cst_16 : f32 to vector<2x1xf32>
    %31 = arith.maximumf %29, %30 : vector<2x1xf32>
    %cst_17 = arith.constant 9.99999974E-6 : f32
    %32 = vector.broadcast %cst_17 : f32 to vector<2x1xf32>
    %33 = arith.addf %31, %32 : vector<2x1xf32>
    %34 = math.rsqrt %33 : vector<2x1xf32>
    %35 = arith.mulf %20, %34 : vector<2x1xf32>
    %36 = arith.mulf %24, %35 : vector<2x1xf32>
    %37 = arith.subf %21, %36 : vector<2x1xf32>
    %c0_18 = arith.constant 0 : index
    %c0_19 = arith.constant 0 : index
    %38 = vector.load %arg1[%c0_18, %c0_19] : memref<4x256xf32, #tpu.memory_space<vmem>>, vector<4x256xf32>
    %39 = vector.broadcast %16 : vector<4x1xf32> to vector<4x256xf32>
    %40 = arith.mulf %38, %39 : vector<4x256xf32>
    %41 = vector.broadcast %18 : vector<4x1xf32> to vector<4x256xf32>
    %42 = arith.addf %40, %41 : vector<4x256xf32>
    %cst_20 = arith.constant 0.000000e+00 : f32
    %43 = vector.broadcast %cst_20 : f32 to vector<4x256xf32>
    %44 = arith.maximumf %42, %43 : vector<4x256xf32>
    %c0_21 = arith.constant 0 : index
    %c0_22 = arith.constant 0 : index
    %45 = vector.load %arg9[%c0_21, %c0_22] : memref<4x256xf32, #tpu.memory_space<vmem>>, vector<4x256xf32>
    tpu.vector_store %arg9[%c0_21, %c0_22], %44 {strides = array<i32>} : memref<4x256xf32, #tpu.memory_space<vmem>>, vector<4x256xf32>,
    %c0_23 = arith.constant 0 : index
    %c0_24 = arith.constant 0 : index
    %46 = vector.load %arg2[%c0_23, %c0_24] : memref<2x256xf32, #tpu.memory_space<vmem>>, vector<2x256xf32>
    %47 = vector.broadcast %35 : vector<2x1xf32> to vector<2x256xf32>
    %48 = arith.mulf %46, %47 : vector<2x256xf32>
    %49 = vector.broadcast %37 : vector<2x1xf32> to vector<2x256xf32>
    %50 = arith.addf %48, %49 : vector<2x256xf32>
    %cst_25 = arith.constant 0.000000e+00 : f32
    %51 = vector.broadcast %cst_25 : f32 to vector<2x256xf32>
    %52 = arith.maximumf %50, %51 : vector<2x256xf32>
    %53 = arith.truncf %52 : vector<2x256xf32> to vector<2x256xbf16>
    %c0_26 = arith.constant 0 : index
    %c0_27 = arith.constant 0 : index
    %54 = vector.load %arg10[%c0_26, %c0_27] : memref<2x256xbf16, #tpu.memory_space<vmem>>, vector<2x256xbf16>
    tpu.vector_store %arg10[%c0_26, %c0_27], %53 {strides = array<i32>} : memref<2x256xbf16, #tpu.memory_space<vmem>>, vector<2x256xbf16>,
    return
  }
  func.func @transform_0(%arg0: i32) -> (i32, i32) {
    %c0_i32 = arith.constant 0 : i32
    %c0_i32_0 = arith.constant 0 : i32
    return %c0_i32, %arg0 : i32, i32
  }
  func.func @transform_1(%arg0: i32) -> (i32, i32) {
    %c0_i32 = arith.constant 0 : i32
    %c0_i32_0 = arith.constant 0 : i32
    return %c0_i32, %arg0 : i32, i32
  }
  func.func @transform_2(%arg0: i32) -> (i32, i32) {
    %c0_i32 = arith.constant 0 : i32
    %c0_i32_0 = arith.constant 0 : i32
    %c0_i32_1 = arith.constant 0 : i32
    return %c0_i32, %c0_i32_0 : i32, i32
  }
  func.func @transform_3(%arg0: i32) -> (i32, i32) {
    %c0_i32 = arith.constant 0 : i32
    %c0_i32_0 = arith.constant 0 : i32
    %c0_i32_1 = arith.constant 0 : i32
    return %c0_i32, %c0_i32_0 : i32, i32
  }
  func.func @transform_4(%arg0: i32) -> (i32, i32) {
    %c0_i32 = arith.constant 0 : i32
    %c0_i32_0 = arith.constant 0 : i32
    %c0_i32_1 = arith.constant 0 : i32
    return %c0_i32, %c0_i32_0 : i32, i32
  }
  func.func @transform_5(%arg0: i32) -> (i32, i32) {
    %c0_i32 = arith.constant 0 : i32
    %c0_i32_0 = arith.constant 0 : i32
    %c0_i32_1 = arith.constant 0 : i32
    return %c0_i32, %c0_i32_0 : i32, i32
  }
  func.func @transform_6(%arg0: i32) -> (i32, i32) {
    %c0_i32 = arith.constant 0 : i32
    %c0_i32_0 = arith.constant 0 : i32
    %c0_i32_1 = arith.constant 0 : i32
    return %c0_i32, %c0_i32_0 : i32, i32
  }
  func.func @transform_7(%arg0: i32) -> (i32, i32) {
    %c0_i32 = arith.constant 0 : i32
    %c0_i32_0 = arith.constant 0 : i32
    %c0_i32_1 = arith.constant 0 : i32
    return %c0_i32, %c0_i32_0 : i32, i32
  }
  func.func @transform_8(%arg0: i32) -> (i32, i32) {
    %c0_i32 = arith.constant 0 : i32
    %c0_i32_0 = arith.constant 0 : i32
    return %c0_i32, %arg0 : i32, i32
  }
  func.func @transform_9(%arg0: i32) -> (i32, i32) {
    %c0_i32 = arith.constant 0 : i32
    %c0_i32_0 = arith.constant 0 : i32
    return %c0_i32, %arg0 : i32, i32
  }
}

module attributes {stable_mosaic.version = 11 : i64} {
  func.func @bn_relu_apply_kernel(%arg0: i32, %arg1: memref<4x288xf32, #tpu.memory_space<vmem>>, %arg2: memref<4x2xf32, #tpu.memory_space<vmem>>, %arg3: memref<4x1xf32, #tpu.memory_space<vmem>>, %arg4: memref<4x1xf32, #tpu.memory_space<vmem>>, %arg5: memref<4x288xf32, #tpu.memory_space<vmem>>) attributes {dimension_semantics = [#tpu.dimension_semantics<parallel>], iteration_bounds = array<i64: 1>, scalar_prefetch = 0 : i64, scratch_operands = 0 : i64, tpu.core_type = #tpu.core_type<tc>, window_params = [{transform_indices = @transform_0, window_bounds = array<i64: 4, 288>}, {pipeline_mode = #tpu.pipeline_mode<synchronous>, transform_indices = @transform_1, window_bounds = array<i64: 4, 2>}, {pipeline_mode = #tpu.pipeline_mode<synchronous>, transform_indices = @transform_2, window_bounds = array<i64: 4, 1>}, {pipeline_mode = #tpu.pipeline_mode<synchronous>, transform_indices = @transform_3, window_bounds = array<i64: 4, 1>}, {transform_indices = @transform_4, window_bounds = array<i64: 4, 288>}]} {
    %c0 = arith.constant 0 : index
    %c0_0 = arith.constant 0 : index
    %0 = vector.load %arg2[%c0, %c0_0] : memref<4x2xf32, #tpu.memory_space<vmem>>, vector<4x2xf32>
    %c0_1 = arith.constant 0 : index
    %c0_2 = arith.constant 0 : index
    %1 = vector.load %arg3[%c0_1, %c0_2] : memref<4x1xf32, #tpu.memory_space<vmem>>, vector<4x1xf32>
    %c0_3 = arith.constant 0 : index
    %c0_4 = arith.constant 0 : index
    %2 = vector.load %arg4[%c0_3, %c0_4] : memref<4x1xf32, #tpu.memory_space<vmem>>, vector<4x1xf32>
    %3 = vector.extract_strided_slice %0 {offsets = [0, 0], sizes = [4, 1], strides = [1, 1]} : vector<4x2xf32> to vector<4x1xf32>
    %cst = arith.constant 0.00347222225 : f32
    %4 = vector.broadcast %cst : f32 to vector<4x1xf32>
    %5 = arith.mulf %3, %4 : vector<4x1xf32>
    %6 = vector.extract_strided_slice %0 {offsets = [0, 1], sizes = [4, 1], strides = [1, 1]} : vector<4x2xf32> to vector<4x1xf32>
    %cst_5 = arith.constant 0.00347222225 : f32
    %7 = vector.broadcast %cst_5 : f32 to vector<4x1xf32>
    %8 = arith.mulf %6, %7 : vector<4x1xf32>
    %9 = arith.mulf %5, %5 : vector<4x1xf32>
    %10 = arith.subf %8, %9 : vector<4x1xf32>
    %cst_6 = arith.constant 0.000000e+00 : f32
    %11 = vector.broadcast %cst_6 : f32 to vector<4x1xf32>
    %12 = arith.maximumf %10, %11 : vector<4x1xf32>
    %cst_7 = arith.constant 9.99999974E-6 : f32
    %13 = vector.broadcast %cst_7 : f32 to vector<4x1xf32>
    %14 = arith.addf %12, %13 : vector<4x1xf32>
    %15 = math.rsqrt %14 : vector<4x1xf32>
    %16 = arith.mulf %1, %15 : vector<4x1xf32>
    %17 = arith.mulf %5, %16 : vector<4x1xf32>
    %18 = arith.subf %2, %17 : vector<4x1xf32>
    %c0_8 = arith.constant 0 : index
    %c0_9 = arith.constant 0 : index
    %19 = vector.load %arg1[%c0_8, %c0_9] : memref<4x288xf32, #tpu.memory_space<vmem>>, vector<4x288xf32>
    %20 = vector.broadcast %16 : vector<4x1xf32> to vector<4x288xf32>
    %21 = arith.mulf %19, %20 : vector<4x288xf32>
    %22 = vector.broadcast %18 : vector<4x1xf32> to vector<4x288xf32>
    %23 = arith.addf %21, %22 : vector<4x288xf32>
    %cst_10 = arith.constant 0.000000e+00 : f32
    %24 = vector.broadcast %cst_10 : f32 to vector<4x288xf32>
    %25 = arith.maximumf %23, %24 : vector<4x288xf32>
    %c0_11 = arith.constant 0 : index
    %c0_12 = arith.constant 0 : index
    %26 = vector.load %arg5[%c0_11, %c0_12] : memref<4x288xf32, #tpu.memory_space<vmem>>, vector<4x288xf32>
    tpu.vector_store %arg5[%c0_11, %c0_12], %25 {strides = array<i32>} : memref<4x288xf32, #tpu.memory_space<vmem>>, vector<4x288xf32>,
    return
  }
  func.func @transform_0(%arg0: i32) -> (i32, i32) {
    %c0_i32 = arith.constant 0 : i32
    %c0_i32_0 = arith.constant 0 : i32
    return %c0_i32, %arg0 : i32, i32
  }
  func.func @transform_1(%arg0: i32) -> (i32, i32) {
    %c0_i32 = arith.constant 0 : i32
    %c0_i32_0 = arith.constant 0 : i32
    %c0_i32_1 = arith.constant 0 : i32
    return %c0_i32, %c0_i32_0 : i32, i32
  }
  func.func @transform_2(%arg0: i32) -> (i32, i32) {
    %c0_i32 = arith.constant 0 : i32
    %c0_i32_0 = arith.constant 0 : i32
    %c0_i32_1 = arith.constant 0 : i32
    return %c0_i32, %c0_i32_0 : i32, i32
  }
  func.func @transform_3(%arg0: i32) -> (i32, i32) {
    %c0_i32 = arith.constant 0 : i32
    %c0_i32_0 = arith.constant 0 : i32
    %c0_i32_1 = arith.constant 0 : i32
    return %c0_i32, %c0_i32_0 : i32, i32
  }
  func.func @transform_4(%arg0: i32) -> (i32, i32) {
    %c0_i32 = arith.constant 0 : i32
    %c0_i32_0 = arith.constant 0 : i32
    return %c0_i32, %arg0 : i32, i32
  }
}

module attributes {stable_mosaic.version = 11 : i64} {
  func.func @conv1x1_stats_kernel(%arg0: i32, %arg1: memref<4x288xbf16, #tpu.memory_space<vmem>>, %arg2: memref<4x4xbf16, #tpu.memory_space<vmem>>, %arg3: memref<4x288xf32, #tpu.memory_space<vmem>>, %arg4: memref<4x2xf32, #tpu.memory_space<vmem>>) attributes {dimension_semantics = [#tpu.dimension_semantics<arbitrary>], iteration_bounds = array<i64: 1>, scalar_prefetch = 0 : i64, scratch_operands = 0 : i64, tpu.core_type = #tpu.core_type<tc>, window_params = [{transform_indices = @transform_0, window_bounds = array<i64: 4, 288>}, {pipeline_mode = #tpu.pipeline_mode<synchronous>, transform_indices = @transform_1, window_bounds = array<i64: 4, 4>}, {transform_indices = @transform_2, window_bounds = array<i64: 4, 288>}, {pipeline_mode = #tpu.pipeline_mode<synchronous>, transform_indices = @transform_3, window_bounds = array<i64: 4, 2>}]} {
    %c0_i32 = arith.constant 0 : i32
    %0 = arith.cmpi eq, %arg0, %c0_i32 : i32
    %1 = arith.extui %0 : i1 to i32
    %c0_i32_0 = arith.constant 0 : i32
    %2 = arith.cmpi ne, %1, %c0_i32_0 : i32
    scf.if %2 {
      %cst_12 = arith.constant 0.000000e+00 : f32
      %16 = vector.broadcast %cst_12 : f32 to vector<4x2xf32>
      %c0_13 = arith.constant 0 : index
      %c0_14 = arith.constant 0 : index
      %17 = vector.load %arg4[%c0_13, %c0_14] : memref<4x2xf32, #tpu.memory_space<vmem>>, vector<4x2xf32>
      tpu.vector_store %arg4[%c0_13, %c0_14], %16 {strides = array<i32>} : memref<4x2xf32, #tpu.memory_space<vmem>>, vector<4x2xf32>,
    } else {
    }
    %c0 = arith.constant 0 : index
    %c0_1 = arith.constant 0 : index
    %3 = vector.load %arg2[%c0, %c0_1] : memref<4x4xbf16, #tpu.memory_space<vmem>>, vector<4x4xbf16>
    %c0_2 = arith.constant 0 : index
    %c0_3 = arith.constant 0 : index
    %4 = vector.load %arg1[%c0_2, %c0_3] : memref<4x288xbf16, #tpu.memory_space<vmem>>, vector<4x288xbf16>
    %cst = arith.constant dense<0.000000e+00> : vector<4x288xf32>
    %5 = tpu.matmul %3, %4, %cst {dimension_numbers = #tpu.dot_dimension_numbers<[1], [0], [0], [1], [0, 0, 1, 1], [], []>} : vector<4x4xbf16>, vector<4x288xbf16>, vector<4x288xf32> -> vector<4x288xf32>
    %c0_4 = arith.constant 0 : index
    %c0_5 = arith.constant 0 : index
    %6 = vector.load %arg3[%c0_4, %c0_5] : memref<4x288xf32, #tpu.memory_space<vmem>>, vector<4x288xf32>
    tpu.vector_store %arg3[%c0_4, %c0_5], %5 {strides = array<i32>} : memref<4x288xf32, #tpu.memory_space<vmem>>, vector<4x288xf32>,
    %c0_6 = arith.constant 0 : index
    %c0_7 = arith.constant 0 : index
    %7 = vector.load %arg4[%c0_6, %c0_7] : memref<4x2xf32, #tpu.memory_space<vmem>>, vector<4x2xf32>
    %cst_8 = arith.constant dense<0.000000e+00> : vector<4xf32>
    %8 = vector.multi_reduction <add>, %5, %cst_8 [1] : vector<4x288xf32> to vector<4xf32>
    %9 = vector.shape_cast %8 : vector<4xf32> to vector<4x1xf32>
    %10 = arith.mulf %5, %5 : vector<4x288xf32>
    %cst_9 = arith.constant dense<0.000000e+00> : vector<4xf32>
    %11 = vector.multi_reduction <add>, %10, %cst_9 [1] : vector<4x288xf32> to vector<4xf32>
    %12 = vector.shape_cast %11 : vector<4xf32> to vector<4x1xf32>
    %13 = tpu.concatenate %9, %12 in 1 : vector<4x1xf32>, vector<4x1xf32> -> vector<4x2xf32>
    %14 = arith.addf %7, %13 : vector<4x2xf32>
    %c0_10 = arith.constant 0 : index
    %c0_11 = arith.constant 0 : index
    %15 = vector.load %arg4[%c0_10, %c0_11] : memref<4x2xf32, #tpu.memory_space<vmem>>, vector<4x2xf32>
    tpu.vector_store %arg4[%c0_10, %c0_11], %14 {strides = array<i32>} : memref<4x2xf32, #tpu.memory_space<vmem>>, vector<4x2xf32>,
    return
  }
  func.func @transform_0(%arg0: i32) -> (i32, i32) {
    %c0_i32 = arith.constant 0 : i32
    %c0_i32_0 = arith.constant 0 : i32
    return %c0_i32, %arg0 : i32, i32
  }
  func.func @transform_1(%arg0: i32) -> (i32, i32) {
    %c0_i32 = arith.constant 0 : i32
    %c0_i32_0 = arith.constant 0 : i32
    %c0_i32_1 = arith.constant 0 : i32
    return %c0_i32, %c0_i32_0 : i32, i32
  }
  func.func @transform_2(%arg0: i32) -> (i32, i32) {
    %c0_i32 = arith.constant 0 : i32
    %c0_i32_0 = arith.constant 0 : i32
    return %c0_i32, %arg0 : i32, i32
  }
  func.func @transform_3(%arg0: i32) -> (i32, i32) {
    %c0_i32 = arith.constant 0 : i32
    %c0_i32_0 = arith.constant 0 : i32
    %c0_i32_1 = arith.constant 0 : i32
    return %c0_i32, %c0_i32_0 : i32, i32
  }
}

module attributes {stable_mosaic.version = 11 : i64} {
  func.func @bn_relu_apply_kernel(%arg0: i32, %arg1: memref<4x256xf32, #tpu.memory_space<vmem>>, %arg2: memref<4x2xf32, #tpu.memory_space<vmem>>, %arg3: memref<4x1xf32, #tpu.memory_space<vmem>>, %arg4: memref<4x1xf32, #tpu.memory_space<vmem>>, %arg5: memref<4x256xf32, #tpu.memory_space<vmem>>) attributes {dimension_semantics = [#tpu.dimension_semantics<parallel>], iteration_bounds = array<i64: 2>, scalar_prefetch = 0 : i64, scratch_operands = 0 : i64, tpu.core_type = #tpu.core_type<tc>, window_params = [{transform_indices = @transform_0, window_bounds = array<i64: 4, 256>}, {pipeline_mode = #tpu.pipeline_mode<synchronous>, transform_indices = @transform_1, window_bounds = array<i64: 4, 2>}, {pipeline_mode = #tpu.pipeline_mode<synchronous>, transform_indices = @transform_2, window_bounds = array<i64: 4, 1>}, {pipeline_mode = #tpu.pipeline_mode<synchronous>, transform_indices = @transform_3, window_bounds = array<i64: 4, 1>}, {transform_indices = @transform_4, window_bounds = array<i64: 4, 256>}]} {
    %c0 = arith.constant 0 : index
    %c0_0 = arith.constant 0 : index
    %0 = vector.load %arg2[%c0, %c0_0] : memref<4x2xf32, #tpu.memory_space<vmem>>, vector<4x2xf32>
    %c0_1 = arith.constant 0 : index
    %c0_2 = arith.constant 0 : index
    %1 = vector.load %arg3[%c0_1, %c0_2] : memref<4x1xf32, #tpu.memory_space<vmem>>, vector<4x1xf32>
    %c0_3 = arith.constant 0 : index
    %c0_4 = arith.constant 0 : index
    %2 = vector.load %arg4[%c0_3, %c0_4] : memref<4x1xf32, #tpu.memory_space<vmem>>, vector<4x1xf32>
    %3 = vector.extract_strided_slice %0 {offsets = [0, 0], sizes = [4, 1], strides = [1, 1]} : vector<4x2xf32> to vector<4x1xf32>
    %cst = arith.constant 0.001953125 : f32
    %4 = vector.broadcast %cst : f32 to vector<4x1xf32>
    %5 = arith.mulf %3, %4 : vector<4x1xf32>
    %6 = vector.extract_strided_slice %0 {offsets = [0, 1], sizes = [4, 1], strides = [1, 1]} : vector<4x2xf32> to vector<4x1xf32>
    %cst_5 = arith.constant 0.001953125 : f32
    %7 = vector.broadcast %cst_5 : f32 to vector<4x1xf32>
    %8 = arith.mulf %6, %7 : vector<4x1xf32>
    %9 = arith.mulf %5, %5 : vector<4x1xf32>
    %10 = arith.subf %8, %9 : vector<4x1xf32>
    %cst_6 = arith.constant 0.000000e+00 : f32
    %11 = vector.broadcast %cst_6 : f32 to vector<4x1xf32>
    %12 = arith.maximumf %10, %11 : vector<4x1xf32>
    %cst_7 = arith.constant 9.99999974E-6 : f32
    %13 = vector.broadcast %cst_7 : f32 to vector<4x1xf32>
    %14 = arith.addf %12, %13 : vector<4x1xf32>
    %15 = math.rsqrt %14 : vector<4x1xf32>
    %16 = arith.mulf %1, %15 : vector<4x1xf32>
    %17 = arith.mulf %5, %16 : vector<4x1xf32>
    %18 = arith.subf %2, %17 : vector<4x1xf32>
    %c0_8 = arith.constant 0 : index
    %c0_9 = arith.constant 0 : index
    %19 = vector.load %arg1[%c0_8, %c0_9] : memref<4x256xf32, #tpu.memory_space<vmem>>, vector<4x256xf32>
    %20 = vector.broadcast %16 : vector<4x1xf32> to vector<4x256xf32>
    %21 = arith.mulf %19, %20 : vector<4x256xf32>
    %22 = vector.broadcast %18 : vector<4x1xf32> to vector<4x256xf32>
    %23 = arith.addf %21, %22 : vector<4x256xf32>
    %cst_10 = arith.constant 0.000000e+00 : f32
    %24 = vector.broadcast %cst_10 : f32 to vector<4x256xf32>
    %25 = arith.maximumf %23, %24 : vector<4x256xf32>
    %c0_11 = arith.constant 0 : index
    %c0_12 = arith.constant 0 : index
    %26 = vector.load %arg5[%c0_11, %c0_12] : memref<4x256xf32, #tpu.memory_space<vmem>>, vector<4x256xf32>
    tpu.vector_store %arg5[%c0_11, %c0_12], %25 {strides = array<i32>} : memref<4x256xf32, #tpu.memory_space<vmem>>, vector<4x256xf32>,
    return
  }
  func.func @transform_0(%arg0: i32) -> (i32, i32) {
    %c0_i32 = arith.constant 0 : i32
    %c0_i32_0 = arith.constant 0 : i32
    return %c0_i32, %arg0 : i32, i32
  }
  func.func @transform_1(%arg0: i32) -> (i32, i32) {
    %c0_i32 = arith.constant 0 : i32
    %c0_i32_0 = arith.constant 0 : i32
    %c0_i32_1 = arith.constant 0 : i32
    return %c0_i32, %c0_i32_0 : i32, i32
  }
  func.func @transform_2(%arg0: i32) -> (i32, i32) {
    %c0_i32 = arith.constant 0 : i32
    %c0_i32_0 = arith.constant 0 : i32
    %c0_i32_1 = arith.constant 0 : i32
    return %c0_i32, %c0_i32_0 : i32, i32
  }
  func.func @transform_3(%arg0: i32) -> (i32, i32) {
    %c0_i32 = arith.constant 0 : i32
    %c0_i32_0 = arith.constant 0 : i32
    %c0_i32_1 = arith.constant 0 : i32
    return %c0_i32, %c0_i32_0 : i32, i32
  }
  func.func @transform_4(%arg0: i32) -> (i32, i32) {
    %c0_i32 = arith.constant 0 : i32
    %c0_i32_0 = arith.constant 0 : i32
    return %c0_i32, %arg0 : i32, i32
  }
}

module attributes {stable_mosaic.version = 11 : i64} {
  func.func @stage2_pass1_kernel(%arg0: i32, %arg1: memref<2x256xbf16, #tpu.memory_space<vmem>>, %arg2: memref<2x256xbf16, #tpu.memory_space<vmem>>, %arg3: memref<4x256xbf16, #tpu.memory_space<vmem>>, %arg4: memref<4x2xbf16, #tpu.memory_space<vmem>>, %arg5: memref<4x256xf32, #tpu.memory_space<vmem>>, %arg6: memref<4x2xf32, #tpu.memory_space<vmem>>) attributes {dimension_semantics = [#tpu.dimension_semantics<arbitrary>], iteration_bounds = array<i64: 2>, scalar_prefetch = 0 : i64, scratch_operands = 0 : i64, tpu.core_type = #tpu.core_type<tc>, window_params = [{transform_indices = @transform_0, window_bounds = array<i64: 2, 256>}, {transform_indices = @transform_1, window_bounds = array<i64: 2, 256>}, {transform_indices = @transform_2, window_bounds = array<i64: 4, 256>}, {pipeline_mode = #tpu.pipeline_mode<synchronous>, transform_indices = @transform_3, window_bounds = array<i64: 4, 2>}, {transform_indices = @transform_4, window_bounds = array<i64: 4, 256>}, {pipeline_mode = #tpu.pipeline_mode<synchronous>, transform_indices = @transform_5, window_bounds = array<i64: 4, 2>}]} {
    %c0_i32 = arith.constant 0 : i32
    %0 = arith.cmpi eq, %arg0, %c0_i32 : i32
    %1 = arith.extui %0 : i1 to i32
    %c0_i32_0 = arith.constant 0 : i32
    %2 = arith.cmpi ne, %1, %c0_i32_0 : i32
    scf.if %2 {
      %cst_16 = arith.constant 0.000000e+00 : f32
      %21 = vector.broadcast %cst_16 : f32 to vector<4x2xf32>
      %c0_17 = arith.constant 0 : index
      %c0_18 = arith.constant 0 : index
      %22 = vector.load %arg6[%c0_17, %c0_18] : memref<4x2xf32, #tpu.memory_space<vmem>>, vector<4x2xf32>
      tpu.vector_store %arg6[%c0_17, %c0_18], %21 {strides = array<i32>} : memref<4x2xf32, #tpu.memory_space<vmem>>, vector<4x2xf32>,
    } else {
    }
    %c0 = arith.constant 0 : index
    %c0_1 = arith.constant 0 : index
    %3 = vector.load %arg1[%c0, %c0_1] : memref<2x256xbf16, #tpu.memory_space<vmem>>, vector<2x256xbf16>
    %c0_2 = arith.constant 0 : index
    %c0_3 = arith.constant 0 : index
    %4 = vector.load %arg2[%c0_2, %c0_3] : memref<2x256xbf16, #tpu.memory_space<vmem>>, vector<2x256xbf16>
    %5 = arith.addf %3, %4 : vector<2x256xbf16>
    %c0_4 = arith.constant 0 : index
    %c0_5 = arith.constant 0 : index
    %6 = vector.load %arg3[%c0_4, %c0_5] : memref<4x256xbf16, #tpu.memory_space<vmem>>, vector<4x256xbf16>
    %7 = arith.extf %6 : vector<4x256xbf16> to vector<4x256xf32>
    %c0_6 = arith.constant 0 : index
    %c0_7 = arith.constant 0 : index
    %8 = vector.load %arg4[%c0_6, %c0_7] : memref<4x2xbf16, #tpu.memory_space<vmem>>, vector<4x2xbf16>
    %cst = arith.constant dense<0.000000e+00> : vector<4x256xf32>
    %9 = tpu.matmul %8, %5, %cst {dimension_numbers = #tpu.dot_dimension_numbers<[1], [0], [0], [1], [0, 0, 1, 1], [], []>} : vector<4x2xbf16>, vector<2x256xbf16>, vector<4x256xf32> -> vector<4x256xf32>
    %10 = arith.addf %7, %9 : vector<4x256xf32>
    %c0_8 = arith.constant 0 : index
    %c0_9 = arith.constant 0 : index
    %11 = vector.load %arg5[%c0_8, %c0_9] : memref<4x256xf32, #tpu.memory_space<vmem>>, vector<4x256xf32>
    tpu.vector_store %arg5[%c0_8, %c0_9], %10 {strides = array<i32>} : memref<4x256xf32, #tpu.memory_space<vmem>>, vector<4x256xf32>,
    %c0_10 = arith.constant 0 : index
    %c0_11 = arith.constant 0 : index
    %12 = vector.load %arg6[%c0_10, %c0_11] : memref<4x2xf32, #tpu.memory_space<vmem>>, vector<4x2xf32>
    %cst_12 = arith.constant dense<0.000000e+00> : vector<4xf32>
    %13 = vector.multi_reduction <add>, %10, %cst_12 [1] : vector<4x256xf32> to vector<4xf32>
    %14 = vector.shape_cast %13 : vector<4xf32> to vector<4x1xf32>
    %15 = arith.mulf %10, %10 : vector<4x256xf32>
    %cst_13 = arith.constant dense<0.000000e+00> : vector<4xf32>
    %16 = vector.multi_reduction <add>, %15, %cst_13 [1] : vector<4x256xf32> to vector<4xf32>
    %17 = vector.shape_cast %16 : vector<4xf32> to vector<4x1xf32>
    %18 = tpu.concatenate %14, %17 in 1 : vector<4x1xf32>, vector<4x1xf32> -> vector<4x2xf32>
    %19 = arith.addf %12, %18 : vector<4x2xf32>
    %c0_14 = arith.constant 0 : index
    %c0_15 = arith.constant 0 : index
    %20 = vector.load %arg6[%c0_14, %c0_15] : memref<4x2xf32, #tpu.memory_space<vmem>>, vector<4x2xf32>
    tpu.vector_store %arg6[%c0_14, %c0_15], %19 {strides = array<i32>} : memref<4x2xf32, #tpu.memory_space<vmem>>, vector<4x2xf32>,
    return
  }
  func.func @transform_0(%arg0: i32) -> (i32, i32) {
    %c0_i32 = arith.constant 0 : i32
    %c0_i32_0 = arith.constant 0 : i32
    return %c0_i32, %arg0 : i32, i32
  }
  func.func @transform_1(%arg0: i32) -> (i32, i32) {
    %c0_i32 = arith.constant 0 : i32
    %c0_i32_0 = arith.constant 0 : i32
    return %c0_i32, %arg0 : i32, i32
  }
  func.func @transform_2(%arg0: i32) -> (i32, i32) {
    %c0_i32 = arith.constant 0 : i32
    %c0_i32_0 = arith.constant 0 : i32
    return %c0_i32, %arg0 : i32, i32
  }
  func.func @transform_3(%arg0: i32) -> (i32, i32) {
    %c0_i32 = arith.constant 0 : i32
    %c0_i32_0 = arith.constant 0 : i32
    %c0_i32_1 = arith.constant 0 : i32
    return %c0_i32, %c0_i32_0 : i32, i32
  }
  func.func @transform_4(%arg0: i32) -> (i32, i32) {
    %c0_i32 = arith.constant 0 : i32
    %c0_i32_0 = arith.constant 0 : i32
    return %c0_i32, %arg0 : i32, i32
  }
  func.func @transform_5(%arg0: i32) -> (i32, i32) {
    %c0_i32 = arith.constant 0 : i32
    %c0_i32_0 = arith.constant 0 : i32
    %c0_i32_1 = arith.constant 0 : i32
    return %c0_i32, %c0_i32_0 : i32, i32
  }
}

module attributes {stable_mosaic.version = 11 : i64} {
  func.func @stage1_pass2_kernel(%arg0: i32, %arg1: memref<4x256xf32, #tpu.memory_space<vmem>>, %arg2: memref<2x256xf32, #tpu.memory_space<vmem>>, %arg3: memref<4x2xf32, #tpu.memory_space<vmem>>, %arg4: memref<2x2xf32, #tpu.memory_space<vmem>>, %arg5: memref<4x1xf32, #tpu.memory_space<vmem>>, %arg6: memref<4x1xf32, #tpu.memory_space<vmem>>, %arg7: memref<2x1xf32, #tpu.memory_space<vmem>>, %arg8: memref<2x1xf32, #tpu.memory_space<vmem>>, %arg9: memref<4x256xf32, #tpu.memory_space<vmem>>, %arg10: memref<4x256xf32, #tpu.memory_space<vmem>>, %arg11: memref<2x256xbf16, #tpu.memory_space<vmem>>) attributes {dimension_semantics = [#tpu.dimension_semantics<parallel>], iteration_bounds = array<i64: 2>, scalar_prefetch = 0 : i64, scratch_operands = 0 : i64, tpu.core_type = #tpu.core_type<tc>, window_params = [{transform_indices = @transform_0, window_bounds = array<i64: 4, 256>}, {transform_indices = @transform_1, window_bounds = array<i64: 2, 256>}, {pipeline_mode = #tpu.pipeline_mode<synchronous>, transform_indices = @transform_2, window_bounds = array<i64: 4, 2>}, {pipeline_mode = #tpu.pipeline_mode<synchronous>, transform_indices = @transform_3, window_bounds = array<i64: 2, 2>}, {pipeline_mode = #tpu.pipeline_mode<synchronous>, transform_indices = @transform_4, window_bounds = array<i64: 4, 1>}, {pipeline_mode = #tpu.pipeline_mode<synchronous>, transform_indices = @transform_5, window_bounds = array<i64: 4, 1>}, {pipeline_mode = #tpu.pipeline_mode<synchronous>, transform_indices = @transform_6, window_bounds = array<i64: 2, 1>}, {pipeline_mode = #tpu.pipeline_mode<synchronous>, transform_indices = @transform_7, window_bounds = array<i64: 2, 1>}, {transform_indices = @transform_8, window_bounds = array<i64: 4, 256>}, {transform_indices = @transform_9, window_bounds = array<i64: 4, 256>}, {transform_indices = @transform_10, window_bounds = array<i64: 2, 256>}]} {
    %c0 = arith.constant 0 : index
    %c0_0 = arith.constant 0 : index
    %0 = vector.load %arg3[%c0, %c0_0] : memref<4x2xf32, #tpu.memory_space<vmem>>, vector<4x2xf32>
    %c0_1 = arith.constant 0 : index
    %c0_2 = arith.constant 0 : index
    %1 = vector.load %arg5[%c0_1, %c0_2] : memref<4x1xf32, #tpu.memory_space<vmem>>, vector<4x1xf32>
    %c0_3 = arith.constant 0 : index
    %c0_4 = arith.constant 0 : index
    %2 = vector.load %arg6[%c0_3, %c0_4] : memref<4x1xf32, #tpu.memory_space<vmem>>, vector<4x1xf32>
    %3 = vector.extract_strided_slice %0 {offsets = [0, 0], sizes = [4, 1], strides = [1, 1]} : vector<4x2xf32> to vector<4x1xf32>
    %cst = arith.constant 0.001953125 : f32
    %4 = vector.broadcast %cst : f32 to vector<4x1xf32>
    %5 = arith.mulf %3, %4 : vector<4x1xf32>
    %6 = vector.extract_strided_slice %0 {offsets = [0, 1], sizes = [4, 1], strides = [1, 1]} : vector<4x2xf32> to vector<4x1xf32>
    %cst_5 = arith.constant 0.001953125 : f32
    %7 = vector.broadcast %cst_5 : f32 to vector<4x1xf32>
    %8 = arith.mulf %6, %7 : vector<4x1xf32>
    %9 = arith.mulf %5, %5 : vector<4x1xf32>
    %10 = arith.subf %8, %9 : vector<4x1xf32>
    %cst_6 = arith.constant 0.000000e+00 : f32
    %11 = vector.broadcast %cst_6 : f32 to vector<4x1xf32>
    %12 = arith.maximumf %10, %11 : vector<4x1xf32>
    %cst_7 = arith.constant 9.99999974E-6 : f32
    %13 = vector.broadcast %cst_7 : f32 to vector<4x1xf32>
    %14 = arith.addf %12, %13 : vector<4x1xf32>
    %15 = math.rsqrt %14 : vector<4x1xf32>
    %16 = arith.mulf %1, %15 : vector<4x1xf32>
    %17 = arith.mulf %5, %16 : vector<4x1xf32>
    %18 = arith.subf %2, %17 : vector<4x1xf32>
    %c0_8 = arith.constant 0 : index
    %c0_9 = arith.constant 0 : index
    %19 = vector.load %arg4[%c0_8, %c0_9] : memref<2x2xf32, #tpu.memory_space<vmem>>, vector<2x2xf32>
    %c0_10 = arith.constant 0 : index
    %c0_11 = arith.constant 0 : index
    %20 = vector.load %arg7[%c0_10, %c0_11] : memref<2x1xf32, #tpu.memory_space<vmem>>, vector<2x1xf32>
    %c0_12 = arith.constant 0 : index
    %c0_13 = arith.constant 0 : index
    %21 = vector.load %arg8[%c0_12, %c0_13] : memref<2x1xf32, #tpu.memory_space<vmem>>, vector<2x1xf32>
    %22 = vector.extract_strided_slice %19 {offsets = [0, 0], sizes = [2, 1], strides = [1, 1]} : vector<2x2xf32> to vector<2x1xf32>
    %cst_14 = arith.constant 0.001953125 : f32
    %23 = vector.broadcast %cst_14 : f32 to vector<2x1xf32>
    %24 = arith.mulf %22, %23 : vector<2x1xf32>
    %25 = vector.extract_strided_slice %19 {offsets = [0, 1], sizes = [2, 1], strides = [1, 1]} : vector<2x2xf32> to vector<2x1xf32>
    %cst_15 = arith.constant 0.001953125 : f32
    %26 = vector.broadcast %cst_15 : f32 to vector<2x1xf32>
    %27 = arith.mulf %25, %26 : vector<2x1xf32>
    %28 = arith.mulf %24, %24 : vector<2x1xf32>
    %29 = arith.subf %27, %28 : vector<2x1xf32>
    %cst_16 = arith.constant 0.000000e+00 : f32
    %30 = vector.broadcast %cst_16 : f32 to vector<2x1xf32>
    %31 = arith.maximumf %29, %30 : vector<2x1xf32>
    %cst_17 = arith.constant 9.99999974E-6 : f32
    %32 = vector.broadcast %cst_17 : f32 to vector<2x1xf32>
    %33 = arith.addf %31, %32 : vector<2x1xf32>
    %34 = math.rsqrt %33 : vector<2x1xf32>
    %35 = arith.mulf %20, %34 : vector<2x1xf32>
    %36 = arith.mulf %24, %35 : vector<2x1xf32>
    %37 = arith.subf %21, %36 : vector<2x1xf32>
    %c0_18 = arith.constant 0 : index
    %c0_19 = arith.constant 0 : index
    %38 = vector.load %arg1[%c0_18, %c0_19] : memref<4x256xf32, #tpu.memory_space<vmem>>, vector<4x256xf32>
    %39 = vector.broadcast %16 : vector<4x1xf32> to vector<4x256xf32>
    %40 = arith.mulf %38, %39 : vector<4x256xf32>
    %41 = vector.broadcast %18 : vector<4x1xf32> to vector<4x256xf32>
    %42 = arith.addf %40, %41 : vector<4x256xf32>
    %cst_20 = arith.constant 0.000000e+00 : f32
    %43 = vector.broadcast %cst_20 : f32 to vector<4x256xf32>
    %44 = arith.maximumf %42, %43 : vector<4x256xf32>
    %c0_21 = arith.constant 0 : index
    %c0_22 = arith.constant 0 : index
    %45 = vector.load %arg9[%c0_21, %c0_22] : memref<4x256xf32, #tpu.memory_space<vmem>>, vector<4x256xf32>
    %46 = arith.addf %44, %45 : vector<4x256xf32>
    %c0_23 = arith.constant 0 : index
    %c0_24 = arith.constant 0 : index
    %47 = vector.load %arg10[%c0_23, %c0_24] : memref<4x256xf32, #tpu.memory_space<vmem>>, vector<4x256xf32>
    tpu.vector_store %arg10[%c0_23, %c0_24], %46 {strides = array<i32>} : memref<4x256xf32, #tpu.memory_space<vmem>>, vector<4x256xf32>,
    %c0_25 = arith.constant 0 : index
    %c0_26 = arith.constant 0 : index
    %48 = vector.load %arg2[%c0_25, %c0_26] : memref<2x256xf32, #tpu.memory_space<vmem>>, vector<2x256xf32>
    %49 = vector.broadcast %35 : vector<2x1xf32> to vector<2x256xf32>
    %50 = arith.mulf %48, %49 : vector<2x256xf32>
    %51 = vector.broadcast %37 : vector<2x1xf32> to vector<2x256xf32>
    %52 = arith.addf %50, %51 : vector<2x256xf32>
    %cst_27 = arith.constant 0.000000e+00 : f32
    %53 = vector.broadcast %cst_27 : f32 to vector<2x256xf32>
    %54 = arith.maximumf %52, %53 : vector<2x256xf32>
    %55 = arith.truncf %54 : vector<2x256xf32> to vector<2x256xbf16>
    %c0_28 = arith.constant 0 : index
    %c0_29 = arith.constant 0 : index
    %56 = vector.load %arg11[%c0_28, %c0_29] : memref<2x256xbf16, #tpu.memory_space<vmem>>, vector<2x256xbf16>
    tpu.vector_store %arg11[%c0_28, %c0_29], %55 {strides = array<i32>} : memref<2x256xbf16, #tpu.memory_space<vmem>>, vector<2x256xbf16>,
    return
  }
  func.func @transform_0(%arg0: i32) -> (i32, i32) {
    %c0_i32 = arith.constant 0 : i32
    %c0_i32_0 = arith.constant 0 : i32
    return %c0_i32, %arg0 : i32, i32
  }
  func.func @transform_1(%arg0: i32) -> (i32, i32) {
    %c0_i32 = arith.constant 0 : i32
    %c0_i32_0 = arith.constant 0 : i32
    return %c0_i32, %arg0 : i32, i32
  }
  func.func @transform_2(%arg0: i32) -> (i32, i32) {
    %c0_i32 = arith.constant 0 : i32
    %c0_i32_0 = arith.constant 0 : i32
    %c0_i32_1 = arith.constant 0 : i32
    return %c0_i32, %c0_i32_0 : i32, i32
  }
  func.func @transform_3(%arg0: i32) -> (i32, i32) {
    %c0_i32 = arith.constant 0 : i32
    %c0_i32_0 = arith.constant 0 : i32
    %c0_i32_1 = arith.constant 0 : i32
    return %c0_i32, %c0_i32_0 : i32, i32
  }
  func.func @transform_4(%arg0: i32) -> (i32, i32) {
    %c0_i32 = arith.constant 0 : i32
    %c0_i32_0 = arith.constant 0 : i32
    %c0_i32_1 = arith.constant 0 : i32
    return %c0_i32, %c0_i32_0 : i32, i32
  }
  func.func @transform_5(%arg0: i32) -> (i32, i32) {
    %c0_i32 = arith.constant 0 : i32
    %c0_i32_0 = arith.constant 0 : i32
    %c0_i32_1 = arith.constant 0 : i32
    return %c0_i32, %c0_i32_0 : i32, i32
  }
  func.func @transform_6(%arg0: i32) -> (i32, i32) {
    %c0_i32 = arith.constant 0 : i32
    %c0_i32_0 = arith.constant 0 : i32
    %c0_i32_1 = arith.constant 0 : i32
    return %c0_i32, %c0_i32_0 : i32, i32
  }
  func.func @transform_7(%arg0: i32) -> (i32, i32) {
    %c0_i32 = arith.constant 0 : i32
    %c0_i32_0 = arith.constant 0 : i32
    %c0_i32_1 = arith.constant 0 : i32
    return %c0_i32, %c0_i32_0 : i32, i32
  }
  func.func @transform_8(%arg0: i32) -> (i32, i32) {
    %c0_i32 = arith.constant 0 : i32
    %c0_i32_0 = arith.constant 0 : i32
    return %c0_i32, %arg0 : i32, i32
  }
  func.func @transform_9(%arg0: i32) -> (i32, i32) {
    %c0_i32 = arith.constant 0 : i32
    %c0_i32_0 = arith.constant 0 : i32
    return %c0_i32, %arg0 : i32, i32
  }
  func.func @transform_10(%arg0: i32) -> (i32, i32) {
    %c0_i32 = arith.constant 0 : i32
    %c0_i32_0 = arith.constant 0 : i32
    return %c0_i32, %arg0 : i32, i32
  }
}

module attributes {stable_mosaic.version = 11 : i64} {
  func.func @bn_relu_apply_kernel(%arg0: i32, %arg1: memref<4x256xf32, #tpu.memory_space<vmem>>, %arg2: memref<4x2xf32, #tpu.memory_space<vmem>>, %arg3: memref<4x1xf32, #tpu.memory_space<vmem>>, %arg4: memref<4x1xf32, #tpu.memory_space<vmem>>, %arg5: memref<4x256xf32, #tpu.memory_space<vmem>>, %arg6: memref<4x256xf32, #tpu.memory_space<vmem>>) attributes {dimension_semantics = [#tpu.dimension_semantics<parallel>], iteration_bounds = array<i64: 2>, scalar_prefetch = 0 : i64, scratch_operands = 0 : i64, tpu.core_type = #tpu.core_type<tc>, window_params = [{transform_indices = @transform_0, window_bounds = array<i64: 4, 256>}, {pipeline_mode = #tpu.pipeline_mode<synchronous>, transform_indices = @transform_1, window_bounds = array<i64: 4, 2>}, {pipeline_mode = #tpu.pipeline_mode<synchronous>, transform_indices = @transform_2, window_bounds = array<i64: 4, 1>}, {pipeline_mode = #tpu.pipeline_mode<synchronous>, transform_indices = @transform_3, window_bounds = array<i64: 4, 1>}, {transform_indices = @transform_4, window_bounds = array<i64: 4, 256>}, {transform_indices = @transform_5, window_bounds = array<i64: 4, 256>}]} {
    %c0 = arith.constant 0 : index
    %c0_0 = arith.constant 0 : index
    %0 = vector.load %arg2[%c0, %c0_0] : memref<4x2xf32, #tpu.memory_space<vmem>>, vector<4x2xf32>
    %c0_1 = arith.constant 0 : index
    %c0_2 = arith.constant 0 : index
    %1 = vector.load %arg3[%c0_1, %c0_2] : memref<4x1xf32, #tpu.memory_space<vmem>>, vector<4x1xf32>
    %c0_3 = arith.constant 0 : index
    %c0_4 = arith.constant 0 : index
    %2 = vector.load %arg4[%c0_3, %c0_4] : memref<4x1xf32, #tpu.memory_space<vmem>>, vector<4x1xf32>
    %3 = vector.extract_strided_slice %0 {offsets = [0, 0], sizes = [4, 1], strides = [1, 1]} : vector<4x2xf32> to vector<4x1xf32>
    %cst = arith.constant 0.001953125 : f32
    %4 = vector.broadcast %cst : f32 to vector<4x1xf32>
    %5 = arith.mulf %3, %4 : vector<4x1xf32>
    %6 = vector.extract_strided_slice %0 {offsets = [0, 1], sizes = [4, 1], strides = [1, 1]} : vector<4x2xf32> to vector<4x1xf32>
    %cst_5 = arith.constant 0.001953125 : f32
    %7 = vector.broadcast %cst_5 : f32 to vector<4x1xf32>
    %8 = arith.mulf %6, %7 : vector<4x1xf32>
    %9 = arith.mulf %5, %5 : vector<4x1xf32>
    %10 = arith.subf %8, %9 : vector<4x1xf32>
    %cst_6 = arith.constant 0.000000e+00 : f32
    %11 = vector.broadcast %cst_6 : f32 to vector<4x1xf32>
    %12 = arith.maximumf %10, %11 : vector<4x1xf32>
    %cst_7 = arith.constant 9.99999974E-6 : f32
    %13 = vector.broadcast %cst_7 : f32 to vector<4x1xf32>
    %14 = arith.addf %12, %13 : vector<4x1xf32>
    %15 = math.rsqrt %14 : vector<4x1xf32>
    %16 = arith.mulf %1, %15 : vector<4x1xf32>
    %17 = arith.mulf %5, %16 : vector<4x1xf32>
    %18 = arith.subf %2, %17 : vector<4x1xf32>
    %c0_8 = arith.constant 0 : index
    %c0_9 = arith.constant 0 : index
    %19 = vector.load %arg1[%c0_8, %c0_9] : memref<4x256xf32, #tpu.memory_space<vmem>>, vector<4x256xf32>
    %20 = vector.broadcast %16 : vector<4x1xf32> to vector<4x256xf32>
    %21 = arith.mulf %19, %20 : vector<4x256xf32>
    %22 = vector.broadcast %18 : vector<4x1xf32> to vector<4x256xf32>
    %23 = arith.addf %21, %22 : vector<4x256xf32>
    %cst_10 = arith.constant 0.000000e+00 : f32
    %24 = vector.broadcast %cst_10 : f32 to vector<4x256xf32>
    %25 = arith.maximumf %23, %24 : vector<4x256xf32>
    %c0_11 = arith.constant 0 : index
    %c0_12 = arith.constant 0 : index
    %26 = vector.load %arg5[%c0_11, %c0_12] : memref<4x256xf32, #tpu.memory_space<vmem>>, vector<4x256xf32>
    %27 = arith.addf %25, %26 : vector<4x256xf32>
    %c0_13 = arith.constant 0 : index
    %c0_14 = arith.constant 0 : index
    %28 = vector.load %arg6[%c0_13, %c0_14] : memref<4x256xf32, #tpu.memory_space<vmem>>, vector<4x256xf32>
    tpu.vector_store %arg6[%c0_13, %c0_14], %27 {strides = array<i32>} : memref<4x256xf32, #tpu.memory_space<vmem>>, vector<4x256xf32>,
    return
  }
  func.func @transform_0(%arg0: i32) -> (i32, i32) {
    %c0_i32 = arith.constant 0 : i32
    %c0_i32_0 = arith.constant 0 : i32
    return %c0_i32, %arg0 : i32, i32
  }
  func.func @transform_1(%arg0: i32) -> (i32, i32) {
    %c0_i32 = arith.constant 0 : i32
    %c0_i32_0 = arith.constant 0 : i32
    %c0_i32_1 = arith.constant 0 : i32
    return %c0_i32, %c0_i32_0 : i32, i32
  }
  func.func @transform_2(%arg0: i32) -> (i32, i32) {
    %c0_i32 = arith.constant 0 : i32
    %c0_i32_0 = arith.constant 0 : i32
    %c0_i32_1 = arith.constant 0 : i32
    return %c0_i32, %c0_i32_0 : i32, i32
  }
  func.func @transform_3(%arg0: i32) -> (i32, i32) {
    %c0_i32 = arith.constant 0 : i32
    %c0_i32_0 = arith.constant 0 : i32
    %c0_i32_1 = arith.constant 0 : i32
    return %c0_i32, %c0_i32_0 : i32, i32
  }
  func.func @transform_4(%arg0: i32) -> (i32, i32) {
    %c0_i32 = arith.constant 0 : i32
    %c0_i32_0 = arith.constant 0 : i32
    return %c0_i32, %arg0 : i32, i32
  }
  func.func @transform_5(%arg0: i32) -> (i32, i32) {
    %c0_i32 = arith.constant 0 : i32
    %c0_i32_0 = arith.constant 0 : i32
    return %c0_i32, %arg0 : i32, i32
  }
}

</mosaic_0001>

<bundles_post_ra>
// kernel: ffc_resnet_block.12
= control target key start
LH: loop header
LB: loop body
LE: loop exit
PB: predicated region body
PF: predicated region fallthrough
CT: control target
= control target key end

     0   :  { %s916_s27 = smov 0   ;;  %s918_s28 = smov 0   ;;  %s1044_s0 = inlined_call_operand.vmem [shape: bf16[72,512], index: 0, kind: input, shape index: {}]   ;;  %s1045_s1 = inlined_call_operand.vmem [shape: bf16[4,72], index: 1, kind: input, shape index: {}]   ;;  %s1046_s2 = inlined_call_operand.vmem [shape: bf16[4,36], index: 2, kind: input, shape index: {}]   ;;  %s1047_s3 = inlined_call_operand.vmem [shape: bf16[2,4], index: 3, kind: input, shape index: {}]   ;;  %s1048_s4 = inlined_call_operand.vmem [shape: f32[4,512], index: 4, kind: output, shape index: {0}]   ;;  %s1049_s5 = inlined_call_operand.vmem [shape: bf16[4,512], index: 5, kind: output, shape index: {1}]   ;;  %s1050_s6 = inlined_call_operand.vmem [shape: f32[2,512], index: 6, kind: output, shape index: {2}]   ;;  %s1051_s7 = inlined_call_operand.vmem [shape: f32[4,2], index: 7, kind: output, shape index: {3}]   ;;  %s1052_s8 = inlined_call_operand.vmem [shape: f32[2,2], index: 8, kind: output, shape index: {4}]  }
   0x1   :  { %s920_s29 = smov 0  }
   0x2 LB: > { %s776_s30 = sadd.s32 4294967295, %s868_s29   ;;  %s933_s9 = sadd.s32 1, %s868_s29   ;;  %s868_s29 = sphi %s920_s29, %s1055_s29   ;;  %s864_s28 = sphi %s918_s28, %s1054_s28   ;;  %s860_s27 = sphi %s916_s27, %s1053_s27  }
   0x3   : > { %s23_s10 = ssub.s32 %s868_s29, %s933_s9  ;;  %s26_s11 = sadd.s32 1, %s864_s28 }
   0x4   : > { %p24_p0 = scmp.eq.s32.totalorder %s23_s10, 0  ;;  %p33_p1 = scmp.ne.s32.totalorder %s864_s28, %s860_s27 }
   0x5   : > { %p34_p2 = scmp.eq.s32.totalorder %s868_s29, 0  ;;  %p779_p4 = scmp.ge.s32.totalorder %s868_s29, 2 }
   0x6   : > { %s942_s12 = scalar_select %p24_p0, %s864_s28, %s26_s11  }
   0x7   : > { %p35_p3 = por %p34_p2, %p33_p1  ;;  %251 = sbr.rel (%p779_p4) target bundleno = 25 (0x19), region = 28 }
   0xc   : > { %254 = sbr.rel (!%p35_p3) target bundleno = 25 (0x19), region = 32  ;;  %s256_s13 = sand.u32 (%p35_p3), 1, %s864_s28  }
   0xd   : > { %s814_s14 = sshll.u32 (%p35_p3), %s868_s29, 3  ;;  %s819_s15 = smul.u32 (%p35_p3), 72, %s256_s13 }
   0xe   : > { %s261_s18 = scalar_lea.vmem (%p35_p3), %s1044_s0, %s814_s14 }
   0xf   : > { %v306_v0 = vld [vmem:[%s261_s18] sm:$0xff] (%p35_p3)  ;;  %v308_v1 = vld [vmem:[%s261_s18 + $0x10] sm:$0xff] (%p35_p3)  ;;  %s258_s19 = scalar_lea.vmem (%p35_p3), [#allocation2], %s819_s15 }
  0x10   : > { %v310_v2 = vld [vmem:[%s261_s18 + $0x20] sm:$0xff] (%p35_p3)  ;;  %307 = vst [vmem:[%s258_s19] sm:$0xff] (%p35_p3), %v306_v0  ;;  %v312_v3 = vld [vmem:[%s261_s18 + $0x30] sm:$0xff] (%p35_p3) }
  0x11   : > { %309 = vst [vmem:[%s258_s19 + $0x8] sm:$0xff] %v308_v1  ;;  %v314_v4 = vld [vmem:[%s261_s18 + $0x40] sm:$0xff]  ;;  %v316_v5 = vld [vmem:[%s261_s18 + $0x50] sm:$0xff] }
  0x12   : > { %311 = vst [vmem:[%s258_s19 + $0x10] sm:$0xff] %v310_v2  ;;  %v318_v6 = vld [vmem:[%s261_s18 + $0x60] sm:$0xff]  ;;  %v320_v7 = vld [vmem:[%s261_s18 + $0x70] sm:$0xff] }
  0x13   : > { %313 = vst [vmem:[%s258_s19 + $0x18] sm:$0xff] %v312_v3  ;;  %v322_v8 = vld [vmem:[%s261_s18 + $0x80] sm:$0xff] }
  0x14   : > { %315 = vst [vmem:[%s258_s19 + $0x20] sm:$0xff] %v314_v4 }
  0x15   : > { %317 = vst [vmem:[%s258_s19 + $0x28] sm:$0xff] %v316_v5 }
  0x16   : > { %319 = vst [vmem:[%s258_s19 + $0x30] sm:$0xff] %v318_v6 }
  0x17   : > { %321 = vst [vmem:[%s258_s19 + $0x38] sm:$0xff] %v320_v7 }
  0x18   : > { %323 = vst [vmem:[%s258_s19 + $0x40] sm:$0xff] %v322_v8 }
  0x19 PF: > { %p782_p5 = scmp.ge.s32.totalorder %s868_s29, 1  ;;  %p328_p6 = scmp.lt.s32.totalorder %s868_s29, 3 }
  0x1b   : > { %p329_p7 = pnand %p782_p5, %p328_p6 }
  0x1c   : > { %s335_s20 = sand.u32 (!%p329_p7), 1, %s860_s27   ;;  %s783_s21 = sshll.u32 (!%p329_p7), %s776_s30, 1 }
  0x1d   : > { %332 = sbr.rel (%p329_p7) target bundleno = 338 (0x152), region = 70  ;;  %p380_p8 = scmp.lt.s32.totalorder (!%p329_p7), %s783_s21, 3 }
  0x1e   : > { %s820_s22 = smul.u32 (!%p329_p7), 72, %s335_s20  ;;  %p789_p9 = scmp.ne.s32.totalorder (!%p329_p7), %s776_s30, 0 }
  0x20   : > { %s970_s17 = scalar_lea.vmem (!%p329_p7), [#allocation2], %s820_s22 }
  0x22   : > { %s1057_s21 = smov (!%p380_p8, %s783_s21), 3  ;;  %401 = sbr.rel (%p789_p9) target bundleno = 42 (0x2a), region = 78 }
  0x23   : > { %s784_s23 = sshll.u32 %s1057_s21, 2  ;;  %s786_s24 = sshll.u32 %s1057_s21, 1 }
  0x24   : > { %s958_s10 = scalar_lea.vmem %s1048_s4, %s784_s23  ;;  %s963_s14 = scalar_lea.vmem %s1049_s5, %s786_s24 }
  0x25   : > { %s968_s27 = scalar_lea.vmem %s1050_s6, %s786_s24 }
  0x27   : > { %vm402_vm0 = vcmask 11264   ;;  %vm404_vm1 = vcmask 9216   ;;  %v870_v9 = vmov 0.0  }
  0x28   : > { %403 = vst.msk [vmem:[%s1051_s7] sm:$0xf] %vm402_vm0, %v870_v9 }
  0x29   : > { %405 = vst.msk [vmem:[%s1052_s8] sm:$0x3] %vm404_vm1, %v870_v9 }
  0x2a PF: > { %v410_v10 = vld [vmem:[%s970_s17 + $0x20] sm:$0xff]  ;;  %v800_v11 = vld [vmem:[%s970_s17 + $0x10] sm:$0xf]  ;;  %v818_v12 = vld [vmem:[%s970_s17 + $0x14] sm:$0xf0]  ;;  %vm505_vm2 = vcmask 1041408  }
  0x2b   : > { %v433_v13 = vunpack.c.l.b16 %v410_v10  ;;  %v434_v14 = vunpack.c.h.b16 %v410_v10  ;;  %v817_v15 = vld [vmem:[%s970_s17 + $0x14] sm:$0xf]  ;;  %v802_v16 = vld [vmem:[%s970_s17 + $0x18] sm:$0xf0]  ;;  %v414_v17 = vld [vmem:[%s970_s17 + $0x40] sm:$0xff]  ;;  %v801_v22 = vor.u32 %v818_v12, %v800_v11  ;;  %vm465_vm3 = vcmask 1043456  }
  0x2c   : > { %v441_v18 = vunpack.c.l.b16 %v414_v17  ;;  %v442_v19 = vunpack.c.h.b16 %v414_v17  ;;  %v412_v23 = vld [vmem:[%s970_s17 + $0x30] sm:$0xff]  ;;  %v413_v24 = vld [vmem:[%s970_s17 + $0x38] sm:$0xff]  ;;  %v805_v25 = vor.u32 %v817_v15, %v802_v16  ;;  %v411_v33 = vld [vmem:[%s970_s17 + $0x28] sm:$0xff]  ;;  %vm501_vm4 = vcmask 293888  }
  0x2d   : > { %v499_v20 = vpack.c.b16 %v433_v13, %v433_v13  ;;  %v500_v21 = vpack.c.b16 %v434_v14, %v434_v14  ;;  %v437_v28 = vunpack.c.l.b16 %v412_v23  ;;  %v439_v31 = vunpack.c.l.b16 %v413_v24  ;;  %v792_v36 = vld [vmem:[%s970_s17] sm:$0xf]  ;;  %v816_v39 = vld [vmem:[%s970_s17 + $0x4] sm:$0xf0]  ;;  %v815_v40 = vld [vmem:[%s970_s17 + $0x4] sm:$0xf] }
  0x2e   : > { %v451_v26 = vpack.c.b16 %v441_v18, %v441_v18  ;;  %v452_v27 = vpack.c.b16 %v442_v19, %v442_v19  ;;  %v438_v32 = vunpack.c.h.b16 %v412_v23  ;;  %v440_v37 = vunpack.c.h.b16 %v413_v24  ;;  %v794_v41 = vld [vmem:[%s970_s17 + $0x8] sm:$0xf0]  ;;  %v498_v55 = vld [vmem:[%s1046_s2] sm:$0x3] }
  0x2f   : > { %v507_v29 = vsel %vm505_vm2, %v499_v20, 0  ;;  %v510_v30 = vsel %vm505_vm2, %v500_v21, 0  ;;  %v539_v38 = vpack.c.b16 %v437_v28, %v437_v28  ;;  %v449_v42 = vpack.c.b16 %v439_v31, %v437_v28  ;;  %v415_v56 = vld [vmem:[%s1045_s1] sm:$0x3] }
  0x30   : > { %517 = vmatpush.bf16.msra.mxu2 %v507_v29  ;;  %530 = vmatpush.bf16.msra.mxu3 %v510_v30  ;;  %v467_v34 = vsel %vm465_vm3, %v451_v26, 0  ;;  %v470_v35 = vsel %vm465_vm3, %v452_v27, 0  ;;  %v540_v43 = vpack.c.b16 %v438_v32, %v438_v32  ;;  %v450_v44 = vpack.c.b16 %v440_v37, %v438_v32  ;;  %v538_v57 = vld [vmem:[%s1047_s3] sm:$0x1] }
  0x31   : > { %475 = vmatpush.bf16.msra.mxu0 %v467_v34  ;;  %488 = vmatpush.bf16.msra.mxu1 %v470_v35  ;;  %v541_v45 = vrot.slane %v539_v38, 2  ;;  %v435_v46 = vunpack.c.l.b16 %v411_v33  ;;  %v436_v47 = vunpack.c.h.b16 %v411_v33  ;;  %v793_v49 = vor.u32 %v816_v39, %v792_v36  ;;  %v599_v30 = vld [vmem:[%s1051_s7] sm:$0xf] }
  0x32   : > { %v542_v48 = vrot.slane %v540_v43, 2  ;;  %v797_v50 = vor.u32 %v815_v40, %v794_v41  ;;  %vm461_vm5 = vcmask 588800   ;;  %vm543_vm6 = vcmask 31744   ;;  %v617_v35 = vld [vmem:[%s1052_s8] sm:$0x3] }
  0x33   : > { %v548_v51 = vsel %vm505_vm2, %v541_v45, 0  ;;  %v447_v53 = vpack.c.b16 %v435_v46, %v433_v13  ;;  %v448_v54 = vpack.c.b16 %v436_v47, %v434_v14  ;;  %vm612_vm7 = vcmask 7168  }
  0x34   : > { %518 = vmatpush.bf16.msra.mxu2 %v801_v22  ;;  %531 = vmatpush.bf16.msra.mxu3 %v805_v25  ;;  %v551_v52 = vsel %vm505_vm2, %v542_v48, 0  ;;  %vm615_vm8 = vcmask 11264   ;;  %vm632_vm9 = vcmask 9216  }
  0x35   : > { %476 = vmatpush.bf16.msra.mxu0 %v449_v42  ;;  %489 = vmatpush.bf16.msra.mxu1 %v450_v44 }
  0x38   : > { %519 = vmatpush.bf16.msra.mxu2 %v793_v49  ;;  %532 = vmatpush.bf16.msra.mxu3 %v797_v50 }
  0x39   : > { %477 = vmatpush.bf16.msra.mxu0 %v447_v53  ;;  %490 = vmatpush.bf16.msra.mxu1 %v448_v54 }
  0x3b   : > { %808 = vmatmul.msk.bf16.vlgmr.msra.gmra.mxu2 %vm501_vm4, %v498_v55  ;;  %809 = vmatmul.msk.bf16.vlgmr.msra.gmra.mxu3 %vm501_vm4, %v498_v55 }
  0x3c   : > { %560 = vmatpush.bf16.msrb.mxu2 %v548_v51  ;;  %573 = vmatpush.bf16.msrb.mxu3 %v551_v52 }
  0x3d   : > { %478 = vmatpush.bf16.msra.mxu0 %v801_v22  ;;  %491 = vmatpush.bf16.msra.mxu1 %v805_v25 }
  0x41   : > { %479 = vmatpush.bf16.msra.mxu0 %v793_v49  ;;  %492 = vmatpush.bf16.msra.mxu1 %v797_v50 }
  0x44   : > { %806 = vmatmul.msk.bf16.vlgmr.msra.gmra.mxu0 %vm461_vm5, %v415_v56  ;;  %807 = vmatmul.msk.bf16.vlgmr.msra.gmra.mxu1 %vm461_vm5, %v415_v56 }
  0x4b   : > { %810 = vmatmul.msk.bf16.vlgmr.msrb.gmra.mxu2 %vm543_vm6, %v538_v57  ;;  %811 = vmatmul.msk.bf16.vlgmr.msrb.gmra.mxu3 %vm543_vm6, %v538_v57 }
  0xbe   : > { %v521_v58 = vpop.f32.mrf.mxu2  ;;  %v534_v59 = vpop.f32.mrf.mxu3 }
  0xbf   : > { %v585_v60 = vpack.c.bf16 %v534_v59, %v521_v58 }
  0xc1   : > { %v587_v61 = vrot.slane %v585_v60, 2  ;;  %v481_v62 = vpop.f32.mrf.mxu0  ;;  %v494_v63 = vpop.f32.mrf.mxu1 }
  0xc2   : > { %v581_v1 = vrot.slane %v494_v63, 4  ;;  %v605_v2 = vmul.f32 %v481_v62, %v481_v62  ;;  %v606_v3 = vmul.f32 %v494_v63, %v494_v63  ;;  %v600_v4 = vsel %vm465_vm3, %v481_v62, 0.0 }
  0xc3   : > { %v590_v0 = vsel %vm505_vm2, %v585_v60, %v587_v61  ;;  %v601_v5 = vsel %vm465_vm3, %v494_v63, 0.0 }
  0xc4   : > { %592 = vst [vmem:[%s963_s14] sm:$0xf] %v590_v0  ;;  %v582_v6 = vsel %vm465_vm3, %v481_v62, %v581_v1  ;;  %v602_v7 = vadd.f32 %v601_v5, %v600_v4  ;;  %v607_v10 = vsel %vm465_vm3, %v605_v2, 0.0  ;;  %v608_v11 = vsel %vm465_vm3, %v606_v3, 0.0 }
  0xc5   : > { %584 = vst [vmem:[%s958_s10] sm:$0xff] %v582_v6  ;;  %v609_v14 = vadd.f32 %v608_v11, %v607_v10 }
  0xc6   : > { %v523_v8 = vpop.f32.mrf.mxu2  ;;  %v536_v9 = vpop.f32.mrf.mxu3  ;;  %603 = vadd.xlane.f32.xlu0 %v602_v7 }
  0xc9   : > { %v483_v12 = vpop.f32.mrf.mxu0  ;;  %v496_v13 = vpop.f32.mrf.mxu1 }
  0xce   : > { %v562_v15 = vpop.f32.mrf.mxu2  ;;  %v575_v16 = vpop.f32.mrf.mxu3  ;;  %610 = vadd.xlane.f32.xlu0 %v609_v14 }
  0xcf   : > { %v595_v17 = vrot.slane %v575_v16, 6  ;;  %v618_v18 = vsel %vm505_vm2, %v562_v15, 0.0  ;;  %v619_v19 = vsel %vm505_vm2, %v575_v16, 0.0  ;;  %v623_v22 = vmul.f32 %v562_v15, %v562_v15 }
  0xd0   : > { %v620_v21 = vadd.f32 %v619_v19, %v618_v18  ;;  %v624_v23 = vmul.f32 %v575_v16, %v575_v16 }
  0xd1   : > { %v596_v20 = vsel %vm505_vm2, %v562_v15, %v595_v17  ;;  %v625_v26 = vsel %vm505_vm2, %v623_v22, 0.0 }
  0xd2   : > { %598 = vst [vmem:[%s968_s27] sm:$0xf] %v596_v20  ;;  %621 = vadd.xlane.f32.xlu1 %v620_v21  ;;  %v626_v27 = vsel %vm505_vm2, %v624_v23, 0.0 }
  0xd3   : > { %v627_v28 = vadd.f32 %v626_v27, %v625_v26 }
  0xd6   : > { %v564_v24 = vpop.f32.mrf.mxu2  ;;  %v577_v25 = vpop.f32.mrf.mxu3 }
  0xda   : > { %628 = vadd.xlane.f32.xlu1 %v627_v28 }
 0x139   : > { %v604_v29 = vpop.xlane.xlu0 %603 }
 0x141   : > { %v611_v31 = vpop.xlane.xlu0 %610 }
 0x142   : > { %v613_v32 = vsel %vm612_vm7, %v604_v29, %v611_v31 }
 0x143   : > { %v614_v33 = vadd.f32 %v613_v32, %v599_v30 }
 0x145   : > { %v622_v34 = vpop.xlane.xlu1 %621  ;;  %616 = vst.msk [vmem:[%s1051_s7] sm:$0xf] %vm615_vm8, %v614_v33 }
 0x14d   : > { %v629_v36 = vpop.xlane.xlu1 %628 }
 0x14e   : > { %v630_v37 = vsel %vm612_vm7, %v622_v34, %v629_v36 }
 0x14f   : > { %v631_v38 = vadd.f32 %v630_v37, %v617_v35 }
 0x151   : > { %633 = vst.msk [vmem:[%s1052_s8] sm:$0x3] %vm632_vm9, %v631_v38 }
 0x152 PF: > { %p16_p10 = scmp.ge.s32.totalorder %s933_s9, 4   ;;  %s1053_s27 = smov %s864_s28 }
 0x153   : > { %s1054_s28 = smov %s942_s12  ;;  %s1055_s29 = smov %s933_s9 }
 0x154   :  { %18 = sbr.rel (!%p16_p10) target bundleno = 2 (0x2), region = 153 }

// kernel: ffc_resnet_block.13
= control target key start
LH: loop header
LB: loop body
LE: loop exit
PB: predicated region body
PF: predicated region fallthrough
CT: control target
= control target key end

     0   :  { %s681_s30 = smov 0   ;;  %s729_s0 = inlined_call_operand.vmem [shape: f32[4,512], index: 0, kind: input, shape index: {}]   ;;  %s730_s1 = inlined_call_operand.vmem [shape: f32[2,512], index: 1, kind: input, shape index: {}]   ;;  %s731_s2 = inlined_call_operand.vmem [shape: f32[4,2], index: 2, kind: input, shape index: {}]   ;;  %s732_s3 = inlined_call_operand.vmem [shape: f32[2,2], index: 3, kind: input, shape index: {}]   ;;  %s733_s4 = inlined_call_operand.vmem [shape: f32[4,1], index: 4, kind: input, shape index: {}]   ;;  %s734_s5 = inlined_call_operand.vmem [shape: f32[4,1], index: 5, kind: input, shape index: {}]   ;;  %s735_s6 = inlined_call_operand.vmem [shape: f32[2,1], index: 6, kind: input, shape index: {}]   ;;  %s736_s7 = inlined_call_operand.vmem [shape: f32[2,1], index: 7, kind: input, shape index: {}]   ;;  %s737_s8 = inlined_call_operand.vmem [shape: f32[4,512], index: 8, kind: output, shape index: {0}]   ;;  %s738_s9 = inlined_call_operand.vmem [shape: bf16[2,512], index: 9, kind: output, shape index: {1}]  }
   0x1 LB: > { %s584_s10 = sadd.s32 4294967295, %s624_s30   ;;  %p588_p0 = scmp.ge.s32.totalorder %s624_s30, 1  ;;  %s624_s30 = sphi %s681_s30, %s20_s30  }
   0x2   : > { %p302_p1 = scmp.lt.s32.totalorder %s624_s30, 3 }
   0x4   : > { %p303_p2 = pnand %p588_p0, %p302_p1 }
   0x5   : > { %s626_s15 = smov (!%p303_p2), 1   ;;  %s627_s16 = smov (!%p303_p2), 127  }
   0x6   : > { %306 = sbr.rel (%p303_p2) target bundleno = 406 (0x196), region = 52  ;;  %s589_s25 = sshll.u32 (!%p303_p2), %s584_s10, 1 }
   0x7   : > { %p348_p3 = scmp.lt.s32.totalorder (!%p303_p2), %s589_s25, 3 }
   0xb   : > { %v399_v0 = vld [vmem:[%s732_s3] sm:$0x3]  ;;  %v628_v28 = vmov 0   ;;  %s740_s25 = smov (!%p348_p3, %s589_s25), 3  ;;  %v629_v41 = vmov 269488144  }
   0xc   : > { %v402_v1 = vmul.f32 0.001953125, %v399_v0  ;;  %v370_v2 = vld [vmem:[%s731_s2] sm:$0xf]  ;;  %611 = vset.pattern.permute.xlu2 %v628_v28  ;;  %612 = vset.pattern.permute.xlu0 %v628_v28  ;;  %v457_v42 = vunpack.c.l.s4 %v629_v41  ;;  %s592_s26 = sshll.u32 %s740_s25, 1  ;;  %vm482_vm6 = vcmask 1040384   ;;  %s368_s12 = scalar_lea.vmem %s738_s9, %s740_s25 }
   0xd   : > { %v373_v4 = vmul.f32 0.001953125, %v370_v2  ;;  %613 = vset.pattern.permute.xlu1 %v628_v28  ;;  %v400_v29 = vld [vmem:[%s735_s6] sm:$0x3]  ;;  %s357_s29 = scalar_lea.vmem %s730_s1, %s592_s26  ;;  %v630_v56 = vmov 839922192   ;;  %s590_s13 = sshll.u32 %s740_s25, 2 }
   0xe   : > { %v403_v3 = vmul.f32 %v402_v1, %v402_v1  ;;  %v371_v33 = vld [vmem:[%s733_s4] sm:$0xf]  ;;  %v458_v44 = vunpack.c.0.s8 %v457_v42  ;;  %v434_v57 = vunpack.c.l.s4 %v630_v56  ;;  %s363_s19 = scalar_lea.vmem %s737_s8, %s590_s13 }
   0xf   : > { %v374_v5 = vmul.f32 %v373_v4, %v373_v4  ;;  %v401_v34 = vld [vmem:[%s736_s7] sm:$0x3] }
  0x10   : > { %405 = vrot.lane.b32.xlu0 %v403_v3, %s626_s15  ;;  %v372_v38 = vld [vmem:[%s734_s5] sm:$0xf]  ;;  %v435_v59 = vunpack.c.0.s8 %v434_v57 }
  0x11   : > { %v451_v46 = vld [vmem:[%s357_s29] sm:$0xf] }
  0x18   : > { %376 = vrot.lane.b32.xlu0 %v374_v5, %s626_s15 }
  0x82   : > { %v406_v6 = vpop.permute.xlu0 %405 }
  0x83   : > { %v408_v7 = vsub.f32 %v402_v1, %v406_v6 }
  0x85   : > { %v409_v8 = vmax.f32 %v408_v7, 0.0 }
  0x87   : > { %v410_v9 = vadd.f32 1e-05, %v409_v8 }
  0x89   : > { %614 = vrsqrt.f32 %v410_v9  ;;  %vm417_vm1 = vweird.f32 %v410_v9 }
  0x8a   : > { %v377_v10 = vpop.permute.xlu0 %376 }
  0x8b   : > { %v379_v11 = vsub.f32 %v373_v4, %v377_v10 }
  0x8d   : > { %v380_v12 = vmax.f32 %v379_v11, 0.0 }
  0x8f   : > { %v615_v13 = vpop.eup %614  ;;  %v381_v14 = vadd.f32 1e-05, %v380_v12 }
  0x90   : > { %v412_v15 = vmul.f32 %v615_v13, %v410_v9  ;;  %vm418_vm0 = vweird.f32 %v615_v13 }
  0x91   : > { %616 = vrsqrt.f32 %v381_v14  ;;  %vm419_vm2 = vmor %vm417_vm1, %vm418_vm0  ;;  %vm388_vm4 = vweird.f32 %v381_v14 }
  0x92   : > { %v413_v16 = vmul.f32 %v615_v13, %v412_v15 }
  0x94   : > { %v414_v17 = vmul.f32 0.5, %v413_v16 }
  0x96   : > { %v415_v18 = vsub.f32 1.5, %v414_v17 }
  0x97   : > { %v617_v19 = vpop.eup %616 }
  0x98   : > { %v383_v20 = vmul.f32 %v617_v19, %v381_v14  ;;  %v416_v21 = vmul.f32 %v615_v13, %v415_v18  ;;  %vm389_vm3 = vweird.f32 %v617_v19 }
  0x99   : > { %vm390_vm5 = vmor %vm388_vm4, %vm389_vm3 }
  0x9a   : > { %v384_v22 = vmul.f32 %v617_v19, %v383_v20  ;;  %v420_v23 = vsel %vm419_vm2, %v615_v13, %v416_v21 }
  0x9b   : > { %422 = vrot.lane.b32.xlu1 %v420_v23, %s627_s16 }
  0x9c   : > { %v385_v24 = vmul.f32 0.5, %v384_v22 }
  0x9e   : > { %v386_v25 = vsub.f32 1.5, %v385_v24 }
  0xa0   : > { %v387_v26 = vmul.f32 %v617_v19, %v386_v25 }
  0xa2   : > { %v391_v27 = vsel %vm390_vm5, %v617_v19, %v387_v26 }
  0xa3   : > { %393 = vrot.lane.b32.xlu1 %v391_v27, %s627_s16  ;;  %s351_s16 = scalar_lea.vmem %s729_s0, %s590_s13 }
  0xa4   : > { %v428_v62 = vld [vmem:[%s351_s16] sm:$0xff] }
 0x10d   : > { %v423_v30 = vpop.permute.xlu1 %422 }
 0x10e   : > { %v425_v31 = vmul.f32 %v423_v30, %v400_v29 }
 0x110   : > { %454 = vperm.xlu2 %611, %v425_v31   ;;  %v426_v32 = vmul.f32 %v425_v31, %v402_v1 }
 0x112   : > { %v427_v37 = vsub.f32 %v401_v34, %v426_v32 }
 0x115   : > { %v394_v35 = vpop.permute.xlu1 %393 }
 0x116   : > { %v396_v36 = vmul.f32 %v394_v35, %v371_v33 }
 0x118   : > { %v397_v39 = vmul.f32 %v396_v36, %v373_v4  ;;  %464 = vperm.xlu2 %611, %v427_v37   ;;  %431 = vperm.xlu0 %612, %v396_v36  }
 0x11a   : > { %v398_v40 = vsub.f32 %v372_v38, %v397_v39 }
 0x11c   : > { %441 = vperm.xlu1 %613, %v398_v40  }
 0x16a   : > { %v455_v43 = vpop.permute.xlu2 %454 }
 0x16b   : > { %v459_v45 = vperm.slane %v455_v43, %v458_v44 }
 0x16d   : > { %v461_v48 = vmul.f32 %v459_v45, %v451_v46 }
 0x172   : > { %v465_v47 = vpop.permute.xlu2 %464 }
 0x173   : > { %v469_v49 = vperm.slane %v465_v47, %v458_v44 }
 0x175   : > { %v471_v50 = vadd.f32 %v469_v49, %v461_v48 }
 0x177   : > { %v472_v51 = vmax.f32 %v471_v50, 0.0 }
 0x179   : > { %474 = vst [vmem:[#allocation1] ss:$4 sm:$0xff] %v472_v51 }
 0x180   : > { %v475_v52 = vld.sshfl [vmem:[#allocation1] sm:$0xff pattern:$0x73625140]  ;;  %v476_v53 = vld.sshfl [vmem:[#allocation1 + $0x8] sm:$0xff pattern:$0x73625140] }
 0x181   : > { %v479_v54 = vpack.c.bf16 %v476_v53, %v475_v52 }
 0x183   : > { %v481_v55 = vrot.slane %v479_v54, 3 }
 0x185   : > { %v485_v58 = vsel %vm482_vm6, %v479_v54, %v481_v55 }
 0x186   : > { %487 = vst [vmem:[%s368_s12] sm:$0x3] %v485_v58 }
 0x18a   : > { %v432_v60 = vpop.permute.xlu0 %431 }
 0x18b   : > { %v436_v61 = vperm.slane %v432_v60, %v435_v59 }
 0x18d   : > { %v438_v0 = vmul.f32 %v436_v61, %v428_v62 }
 0x18e   : > { %v442_v63 = vpop.permute.xlu1 %441 }
 0x18f   : > { %v446_v1 = vperm.slane %v442_v63, %v435_v59 }
 0x191   : > { %v448_v2 = vadd.f32 %v446_v1, %v438_v0 }
 0x193   : > { %v449_v3 = vmax.f32 %v448_v2, 0.0 }
 0x195   : > { %450 = vst [vmem:[%s363_s19] sm:$0xff] %v449_v3 }
 0x196 PF: > { %s20_s30 = sadd.s32 1, %s624_s30  }
 0x197   : > { %p17_p4 = scmp.ge.s32.totalorder %s20_s30, 4  }
 0x199   :  { %19 = sbr.rel (!%p17_p4) target bundleno = 1 (0x1), region = 97 }

// kernel: reverse.5
= control target key start
LH: loop header
LB: loop body
LE: loop exit
PB: predicated region body
PF: predicated region fallthrough
CT: control target
= control target key end

     0   :  { %v56_v3 = vlaneseq  ;;  %v49_v5 = vld [vmem:[#allocation0 + $0x7] ss:$-1 sm:$0xff]  ;;  %v63_v6 = vld [vmem:[#allocation0 + $0x17] ss:$-1 sm:$0xff]  ;;  %s199_s0 = inlined_call_operand.vmem [shape: f32[2,2,16,7], index: 0, kind: input, shape index: {}]   ;;  %s200_s1 = inlined_call_operand.vmem [shape: f32[2,2,16,7], index: 1, kind: output, shape index: {}]  }
   0x1   :  { %v37_v0 = vld [vmem:[%s199_s0] sm:$0xff]  ;;  %v39_v1 = vld [vmem:[%s199_s0 + $0x8] sm:$0xff]  ;;  %v41_v2 = vld [vmem:[%s199_s0 + $0x10] sm:$0xff]  ;;  %v50_v7 = vrot.slane %v49_v5, 1  ;;  %v64_v8 = vrot.slane %v63_v6, 1 }
   0x2   :  { %38 = vst [vmem:[#allocation0 + $0x8] sm:$0xff] %v37_v0  ;;  %v43_v4 = vld [vmem:[%s199_s0 + $0x18] sm:$0xff]  ;;  %v77_v9 = vld [vmem:[#allocation0 + $0x27] ss:$-1 sm:$0xff]  ;;  %v91_v11 = vld [vmem:[#allocation0 + $0x37] ss:$-1 sm:$0xff] }
   0x3   :  { %40 = vst [vmem:[#allocation0 + $0x18] sm:$0xff] %v39_v1  ;;  %v78_v10 = vrot.slane %v77_v9, 1  ;;  %v57_v12 = vshrl.u32 %v56_v3, 7  ;;  %v92_v13 = vrot.slane %v91_v11, 1 }
   0x4   :  { %42 = vst [vmem:[#allocation0 + $0x28] sm:$0xff] %v41_v2 }
   0x5   :  { %44 = vst [vmem:[#allocation0 + $0x38] sm:$0xff] %v43_v4  ;;  %vm58_vm0 = vcmp.lt.s32.totalorder %v57_v12, 7 }
   0x6   :  { %51 = vst [vmem:[#allocation1] sm:$0xff] %v50_v7 }
   0x7   :  { %65 = vst [vmem:[#allocation1 + $0x8] sm:$0xff] %v64_v8 }
   0x8   :  { %79 = vst [vmem:[#allocation1 + $0x10] sm:$0xff] %v78_v10 }
   0x9   :  { %v54_v14 = vld [vmem:[#allocation0 + $0xf] ss:$-1 sm:$0xff]  ;;  %93 = vst [vmem:[#allocation1 + $0x18] sm:$0xff] %v92_v13 }
   0xa   :  { %v55_v15 = vrot.slane %v54_v14, 1  ;;  %v68_v16 = vld [vmem:[#allocation0 + $0x1f] ss:$-1 sm:$0xff] }
   0xb   :  { %v69_v17 = vrot.slane %v68_v16, 1  ;;  %v82_v18 = vld [vmem:[#allocation0 + $0x2f] ss:$-1 sm:$0xff] }
   0xc   :  { %59 = vst.msk [vmem:[#allocation1] sm:$0xff] %vm58_vm0, %v55_v15  ;;  %v83_v19 = vrot.slane %v82_v18, 1  ;;  %v96_v20 = vld [vmem:[#allocation0 + $0x3f] ss:$-1 sm:$0xff] }
   0xd   :  { %73 = vst.msk [vmem:[#allocation1 + $0x8] sm:$0xff] %vm58_vm0, %v69_v17  ;;  %v97_v21 = vrot.slane %v96_v20, 1 }
   0xe   :  { %87 = vst.msk [vmem:[#allocation1 + $0x10] sm:$0xff] %vm58_vm0, %v83_v19 }
   0xf   :  { %101 = vst.msk [vmem:[#allocation1 + $0x18] sm:$0xff] %vm58_vm0, %v97_v21 }
  0x13   :  { %v136_v22 = vld [vmem:[#allocation1] sm:$0xff] }
  0x14   :  { %137 = vst [vmem:[%s200_s1] sm:$0xff] %v136_v22  ;;  %v138_v23 = vld [vmem:[#allocation1 + $0x8] sm:$0xff] }
  0x15   :  { %139 = vst [vmem:[%s200_s1 + $0x8] sm:$0xff] %v138_v23  ;;  %v140_v24 = vld [vmem:[#allocation1 + $0x10] sm:$0xff] }
  0x16   :  { %141 = vst [vmem:[%s200_s1 + $0x10] sm:$0xff] %v140_v24  ;;  %v142_v25 = vld [vmem:[#allocation1 + $0x18] sm:$0xff] }
  0x17   :  { %143 = vst [vmem:[%s200_s1 + $0x18] sm:$0xff] %v142_v25 }

// kernel: ffc_resnet_block.15
= control target key start
LH: loop header
LB: loop body
LE: loop exit
PB: predicated region body
PF: predicated region fallthrough
CT: control target
= control target key end

     0   :  { %s87_s17 = smov 1   ;;  %v89_v14 = vmov 0   ;;  %v90_v21 = vmov 839922192   ;;  %vm73_vm3 = vcmask 257024   ;;  %s137_s1 = inlined_call_operand.vmem [shape: f32[4,2], index: 1, kind: input, shape index: {}]   ;;  %s138_s2 = inlined_call_operand.vmem [shape: f32[4,1], index: 2, kind: input, shape index: {}]   ;;  %s139_s3 = inlined_call_operand.vmem [shape: f32[4,1], index: 3, kind: input, shape index: {}]   ;;  %s140_s0 = inlined_call_operand.vmem [shape: f32[4,288], index: 0, kind: input, shape index: {}]   ;;  %s141_s4 = inlined_call_operand.vmem [shape: f32[4,288], index: 4, kind: output, shape index: {}]  }
   0x1   :  { %v17_v0 = vld [vmem:[%s137_s1] sm:$0xf]  ;;  %s88_s1 = smov 127   ;;  %83 = vset.pattern.permute.xlu1 %v89_v14  ;;  %84 = vset.pattern.permute.xlu0 %v89_v14  ;;  %v53_v22 = vunpack.c.l.s4 %v90_v21  ;;  %v47_v27 = vld [vmem:[%s140_s0 + $0x8] sm:$0xf] }
   0x2   :  { %v20_v1 = vmul.f32 0.0034722222, %v17_v0  ;;  %v18_v15 = vld [vmem:[%s138_s2] sm:$0xf] }
   0x3   :  { %v19_v19 = vld [vmem:[%s139_s3] sm:$0xf]  ;;  %v54_v24 = vunpack.c.0.s8 %v53_v22 }
   0x4   :  { %v21_v2 = vmul.f32 %v20_v1, %v20_v1  ;;  %v46_v26 = vld [vmem:[%s140_s0] sm:$0xff] }
   0x6   :  { %23 = vrot.lane.b32.xlu0 %v21_v2, %s87_s17 }
  0x78   :  { %v24_v3 = vpop.permute.xlu0 %23 }
  0x79   :  { %v26_v4 = vsub.f32 %v20_v1, %v24_v3 }
  0x7b   :  { %v27_v5 = vmax.f32 %v26_v4, 0.0 }
  0x7d   :  { %v28_v6 = vadd.f32 1e-05, %v27_v5 }
  0x7f   :  { %85 = vrsqrt.f32 %v28_v6  ;;  %vm35_vm1 = vweird.f32 %v28_v6 }
  0x85   :  { %v86_v7 = vpop.eup %85 }
  0x86   :  { %v30_v8 = vmul.f32 %v86_v7, %v28_v6  ;;  %vm36_vm0 = vweird.f32 %v86_v7 }
  0x87   :  { %vm37_vm2 = vmor %vm35_vm1, %vm36_vm0 }
  0x88   :  { %v31_v9 = vmul.f32 %v86_v7, %v30_v8 }
  0x8a   :  { %v32_v10 = vmul.f32 0.5, %v31_v9 }
  0x8c   :  { %v33_v11 = vsub.f32 1.5, %v32_v10 }
  0x8e   :  { %v34_v12 = vmul.f32 %v86_v7, %v33_v11 }
  0x90   :  { %v38_v13 = vsel %vm37_vm2, %v86_v7, %v34_v12 }
  0x91   :  { %40 = vrot.lane.b32.xlu0 %v38_v13, %s88_s1 }
 0x103   :  { %v41_v16 = vpop.permute.xlu0 %40 }
 0x104   :  { %v43_v17 = vmul.f32 %v41_v16, %v18_v15 }
 0x106   :  { %50 = vperm.xlu1 %83, %v43_v17   ;;  %v44_v18 = vmul.f32 %v43_v17, %v20_v1 }
 0x108   :  { %v45_v20 = vsub.f32 %v19_v19, %v44_v18 }
 0x10e   :  { %61 = vperm.xlu1 %83, %v45_v20  }
 0x178   :  { %v51_v23 = vpop.permute.xlu1 %50 }
 0x179   :  { %v55_v25 = vperm.slane %v51_v23, %v54_v24 }
 0x17b   :  { %v57_v29 = vmul.f32 %v55_v25, %v46_v26  ;;  %v58_v30 = vmul.f32 %v55_v25, %v47_v27 }
 0x180   :  { %v62_v28 = vpop.permute.xlu1 %61 }
 0x181   :  { %v66_v31 = vperm.slane %v62_v28, %v54_v24 }
 0x183   :  { %v68_v32 = vadd.f32 %v66_v31, %v57_v29  ;;  %v69_v33 = vadd.f32 %v66_v31, %v58_v30 }
 0x185   :  { %v70_v34 = vmax.f32 %v68_v32, 0.0  ;;  %v71_v35 = vmax.f32 %v69_v33, 0.0 }
 0x187   :  { %72 = vst [vmem:[%s141_s4] sm:$0xff] %v70_v34 }
 0x188   :  { %74 = vst.msk [vmem:[%s141_s4 + $0x8] sm:$0xf] %vm73_vm3, %v71_v35 }

// kernel: ffc_resnet_block.14
= control target key start
LH: loop header
LB: loop body
LE: loop exit
PB: predicated region body
PF: predicated region fallthrough
CT: control target
= control target key end

     0   :  { %vm31_vm0 = vcmask 1041408   ;;  %vm27_vm1 = vcmask 31744   ;;  %vm80_vm2 = vcmask 1043456   ;;  %vm84_vm3 = vcmask 257024   ;;  %s168_s0 = inlined_call_operand.vmem [shape: bf16[4,288], index: 0, kind: input, shape index: {}]   ;;  %s169_s1 = inlined_call_operand.vmem [shape: bf16[4,4], index: 1, kind: input, shape index: {}]   ;;  %s170_s2 = inlined_call_operand.vmem [shape: f32[4,288], index: 2, kind: output, shape index: {0}]   ;;  %s171_s3 = inlined_call_operand.vmem [shape: f32[4,2], index: 3, kind: output, shape index: {1}]  }
   0x1   :  { %v21_v0 = vld [vmem:[%s168_s0] sm:$0x3f]  ;;  %vm18_vm4 = vcmask 11264   ;;  %v121_v29 = vmov 0.0   ;;  %vm104_vm5 = vcmask 7168  }
   0x2   :  { %23 = vst [vmem:[#allocation1] ss:$4 sm:$0xff] %v21_v0  ;;  %v20_v7 = vld [vmem:[%s169_s1] sm:$0x3] }
   0x3   :  { %19 = vst.msk [vmem:[%s171_s3] sm:$0xf] %vm18_vm4, %v121_v29 }
   0x9   :  { %v24_v1 = vld.sshfl [vmem:[#allocation1] sm:$0xff pattern:$0x73625140]  ;;  %v25_v2 = vld.sshfl [vmem:[#allocation1 + $0x8] sm:$0xff pattern:$0x73625140] }
   0xa   :  { %v32_v3 = vsel %vm31_vm0, %v24_v1, 0  ;;  %v34_v4 = vsel %vm31_vm0, %v25_v2, 0  ;;  %v26_v5 = vld.sshfl [vmem:[#allocation1 + $0x10] sm:$0xff pattern:$0x73625140] }
   0xb   :  { %45 = vmatpush.bf16.msra.mxu0 %v32_v3  ;;  %58 = vmatpush.bf16.msra.mxu1 %v34_v4  ;;  %v36_v6 = vsel %vm31_vm0, %v26_v5, 0  ;;  %v86_v31 = vld [vmem:[%s171_s3] sm:$0xf] }
   0xc   :  { %71 = vmatpush.bf16.msra.mxu2 %v36_v6 }
   0xe   :  { %117 = vmatmul.msk.bf16.vlgmr.msra.gmra.mxu0 %vm27_vm1, %v20_v7  ;;  %118 = vmatmul.msk.bf16.vlgmr.msra.gmra.mxu1 %vm27_vm1, %v20_v7 }
   0xf   :  { %119 = vmatmul.msk.bf16.vlgmr.msra.gmra.mxu2 %vm27_vm1, %v20_v7 }
  0x8b   :  { %v47_v8 = vpop.f32.mrf.mxu0  ;;  %v60_v9 = vpop.f32.mrf.mxu1 }
  0x8c   :  { %v79_v10 = vrot.slane %v60_v9, 4  ;;  %v87_v11 = vsel %vm80_vm2, %v47_v8, 0.0  ;;  %v88_v12 = vsel %vm80_vm2, %v60_v9, 0.0  ;;  %v94_v15 = vmul.f32 %v47_v8, %v47_v8 }
  0x8d   :  { %v89_v14 = vadd.f32 %v88_v12, %v87_v11  ;;  %v95_v16 = vmul.f32 %v60_v9, %v60_v9 }
  0x8e   :  { %v81_v13 = vsel %vm80_vm2, %v47_v8, %v79_v10  ;;  %v97_v23 = vsel %vm80_vm2, %v94_v15, 0.0 }
  0x8f   :  { %83 = vst [vmem:[%s170_s2] sm:$0xff] %v81_v13  ;;  %v98_v24 = vsel %vm80_vm2, %v95_v16, 0.0 }
  0x90   :  { %v99_v25 = vadd.f32 %v98_v24, %v97_v23 }
  0x92   :  { %v73_v17 = vpop.f32.mrf.mxu2 }
  0x93   :  { %v49_v18 = vpop.f32.mrf.mxu0  ;;  %v62_v19 = vpop.f32.mrf.mxu1  ;;  %85 = vst.msk [vmem:[%s170_s2 + $0x8] sm:$0xf] %vm84_vm3, %v73_v17  ;;  %v90_v20 = vsel %vm84_vm3, %v73_v17, 0.0  ;;  %v96_v22 = vmul.f32 %v73_v17, %v73_v17 }
  0x94   :  { %v91_v21 = vadd.f32 %v90_v20, %v89_v14 }
  0x95   :  { %v100_v26 = vsel %vm84_vm3, %v96_v22, 0.0 }
  0x96   :  { %92 = vadd.xlane.f32.xlu0 %v91_v21  ;;  %v101_v28 = vadd.f32 %v100_v26, %v99_v25 }
  0x9a   :  { %v75_v27 = vpop.f32.mrf.mxu2 }
  0x9e   :  { %102 = vadd.xlane.f32.xlu0 %v101_v28 }
 0x109   :  { %v93_v30 = vpop.xlane.xlu0 %92 }
 0x111   :  { %v103_v32 = vpop.xlane.xlu0 %102 }
 0x112   :  { %v105_v33 = vsel %vm104_vm5, %v93_v30, %v103_v32 }
 0x113   :  { %v106_v34 = vadd.f32 %v105_v33, %v86_v31 }
 0x115   :  { %108 = vst.msk [vmem:[%s171_s3] sm:$0xf] %vm18_vm4, %v106_v34 }

// kernel: ffc_resnet_block.17
= control target key start
LH: loop header
LB: loop body
LE: loop exit
PB: predicated region body
PF: predicated region fallthrough
CT: control target
= control target key end

     0   :  { %s373_s15 = smov 0   ;;  %s401_s0 = inlined_call_operand.vmem [shape: f32[4,512], index: 0, kind: input, shape index: {}]   ;;  %s402_s1 = inlined_call_operand.vmem [shape: f32[4,2], index: 1, kind: input, shape index: {}]   ;;  %s403_s2 = inlined_call_operand.vmem [shape: f32[4,1], index: 2, kind: input, shape index: {}]   ;;  %s404_s3 = inlined_call_operand.vmem [shape: f32[4,1], index: 3, kind: input, shape index: {}]   ;;  %s405_s4 = inlined_call_operand.vmem [shape: f32[4,512], index: 4, kind: output, shape index: {}]  }
   0x1 LB: > { %s309_s16 = sadd.s32 4294967295, %s342_s15   ;;  %p313_p0 = scmp.ge.s32.totalorder %s342_s15, 1  ;;  %s342_s15 = sphi %s373_s15, %s14_s15  }
   0x2   : > { %p163_p1 = scmp.lt.s32.totalorder %s342_s15, 3 }
   0x4   : > { %p164_p2 = pnand %p313_p0, %p163_p1 }
   0x5   : > { %s344_s19 = smov (!%p164_p2), 1   ;;  %s345_s20 = smov (!%p164_p2), 127  }
   0x6   : > { %167 = sbr.rel (%p164_p2) target bundleno = 402 (0x192), region = 36  ;;  %s314_s25 = sshll.u32 (!%p164_p2), %s309_s16, 1 }
   0x7   : > { %p190_p3 = scmp.lt.s32.totalorder (!%p164_p2), %s314_s25, 3 }
   0xb   : > { %v201_v0 = vld [vmem:[%s402_s1] sm:$0xf]  ;;  %v346_v14 = vmov 0   ;;  %s407_s25 = smov (!%p190_p3, %s314_s25), 3  ;;  %v347_v21 = vmov 839922192  }
   0xc   : > { %v204_v1 = vmul.f32 0.001953125, %v201_v0  ;;  %332 = vset.pattern.permute.xlu1 %v346_v14  ;;  %333 = vset.pattern.permute.xlu0 %v346_v14  ;;  %v202_v15 = vld [vmem:[%s403_s2] sm:$0xf]  ;;  %v236_v22 = vunpack.c.l.s4 %v347_v21  ;;  %s315_s26 = sshll.u32 %s407_s25, 2 }
   0xd   : > { %v203_v19 = vld [vmem:[%s404_s3] sm:$0xf]  ;;  %s193_s29 = scalar_lea.vmem %s401_s0, %s315_s26  ;;  %s199_s6 = scalar_lea.vmem %s405_s4, %s315_s26 }
   0xe   : > { %v205_v2 = vmul.f32 %v204_v1, %v204_v1  ;;  %v237_v24 = vunpack.c.0.s8 %v236_v22  ;;  %v230_v26 = vld [vmem:[%s193_s29] sm:$0xff] }
  0x10   : > { %207 = vrot.lane.b32.xlu0 %v205_v2, %s344_s19 }
  0x82   : > { %v208_v3 = vpop.permute.xlu0 %207 }
  0x83   : > { %v210_v4 = vsub.f32 %v204_v1, %v208_v3 }
  0x85   : > { %v211_v5 = vmax.f32 %v210_v4, 0.0 }
  0x87   : > { %v212_v6 = vadd.f32 1e-05, %v211_v5 }
  0x89   : > { %334 = vrsqrt.f32 %v212_v6  ;;  %vm219_vm1 = vweird.f32 %v212_v6 }
  0x8f   : > { %v335_v7 = vpop.eup %334 }
  0x90   : > { %v214_v8 = vmul.f32 %v335_v7, %v212_v6  ;;  %vm220_vm0 = vweird.f32 %v335_v7 }
  0x91   : > { %vm221_vm2 = vmor %vm219_vm1, %vm220_vm0 }
  0x92   : > { %v215_v9 = vmul.f32 %v335_v7, %v214_v8 }
  0x94   : > { %v216_v10 = vmul.f32 0.5, %v215_v9 }
  0x96   : > { %v217_v11 = vsub.f32 1.5, %v216_v10 }
  0x98   : > { %v218_v12 = vmul.f32 %v335_v7, %v217_v11 }
  0x9a   : > { %v222_v13 = vsel %vm221_vm2, %v335_v7, %v218_v12 }
  0x9b   : > { %224 = vrot.lane.b32.xlu0 %v222_v13, %s345_s20 }
 0x10d   : > { %v225_v16 = vpop.permute.xlu0 %224 }
 0x10e   : > { %v227_v17 = vmul.f32 %v225_v16, %v202_v15 }
 0x110   : > { %233 = vperm.xlu1 %332, %v227_v17   ;;  %v228_v18 = vmul.f32 %v227_v17, %v204_v1 }
 0x112   : > { %v229_v20 = vsub.f32 %v203_v19, %v228_v18 }
 0x118   : > { %243 = vperm.xlu1 %332, %v229_v20  }
 0x182   : > { %v234_v23 = vpop.permute.xlu1 %233 }
 0x183   : > { %v238_v25 = vperm.slane %v234_v23, %v237_v24 }
 0x185   : > { %v240_v28 = vmul.f32 %v238_v25, %v230_v26 }
 0x18a   : > { %v244_v27 = vpop.permute.xlu1 %243 }
 0x18b   : > { %v248_v29 = vperm.slane %v244_v27, %v237_v24 }
 0x18d   : > { %v250_v30 = vadd.f32 %v248_v29, %v240_v28 }
 0x18f   : > { %v251_v31 = vmax.f32 %v250_v30, 0.0 }
 0x191   : > { %252 = vst [vmem:[%s199_s6] sm:$0xff] %v251_v31 }
 0x192 PF: > { %s14_s15 = sadd.s32 1, %s342_s15  }
 0x193   : > { %p11_p4 = scmp.ge.s32.totalorder %s14_s15, 4  }
 0x195   :  { %13 = sbr.rel (!%p11_p4) target bundleno = 1 (0x1), region = 66 }

// kernel: ffc_resnet_block.16
= control target key start
LH: loop header
LB: loop body
LE: loop exit
PB: predicated region body
PF: predicated region fallthrough
CT: control target
= control target key end

     0   :  { %s505_s18 = smov 0   ;;  %s548_s0 = inlined_call_operand.vmem [shape: bf16[2,512], index: 0, kind: input, shape index: {}]   ;;  %s549_s1 = inlined_call_operand.vmem [shape: bf16[2,512], index: 1, kind: input, shape index: {}]   ;;  %s550_s2 = inlined_call_operand.vmem [shape: bf16[4,512], index: 2, kind: input, shape index: {}]   ;;  %s551_s3 = inlined_call_operand.vmem [shape: bf16[4,2], index: 3, kind: input, shape index: {}]   ;;  %s552_s4 = inlined_call_operand.vmem [shape: f32[4,512], index: 4, kind: output, shape index: {0}]   ;;  %s553_s5 = inlined_call_operand.vmem [shape: f32[4,2], index: 5, kind: output, shape index: {1}]  }
   0x1 LB: > { %s441_s19 = sadd.s32 4294967295, %s472_s18   ;;  %p445_p0 = scmp.ge.s32.totalorder %s472_s18, 1  ;;  %s472_s18 = sphi %s505_s18, %s16_s18  }
   0x2   : > { %p206_p1 = scmp.lt.s32.totalorder %s472_s18, 3 }
   0x4   : > { %p207_p2 = pnand %p445_p0, %p206_p1 }
   0x5   : > { %s446_s20 = sshll.u32 (!%p207_p2), %s441_s19, 1  ;;  %p452_p4 = scmp.ne.s32.totalorder (!%p207_p2), %s441_s19, 0 }
   0x6   : > { %210 = sbr.rel (%p207_p2) target bundleno = 309 (0x135), region = 36  ;;  %p243_p3 = scmp.lt.s32.totalorder (!%p207_p2), %s446_s20, 3 }
   0xb   : > { %s555_s20 = smov (!%p243_p3, %s446_s20), 3  ;;  %268 = sbr.rel (%p452_p4) target bundleno = 18 (0x12), region = 40 }
   0xc   : > { %s245_s23 = scalar_lea.vmem %s548_s0, %s555_s20  ;;  %s250_s26 = scalar_lea.vmem %s549_s1, %s555_s20 }
   0xd   : > { %s449_s27 = sshll.u32 %s555_s20, 1  ;;  %s451_s28 = sshll.u32 %s555_s20, 2 }
   0xe   : > { %s256_s6 = scalar_lea.vmem %s550_s2, %s449_s27  ;;  %s525_s9 = scalar_lea.vmem %s552_s4, %s451_s28 }
  0x10   : > { %vm269_vm0 = vcmask 11264   ;;  %v474_v0 = vmov 0.0  }
  0x11   : > { %270 = vst.msk [vmem:[%s553_s5] sm:$0xf] %vm269_vm0, %v474_v0 }
  0x12 PF: > { %v271_v1 = vld [vmem:[%s245_s23] sm:$0x3]  ;;  %vm291_vm1 = vcmask 1040384   ;;  %vm287_vm2 = vcmask 15360   ;;  %vm327_vm3 = vcmask 1043456   ;;  %vm356_vm4 = vcmask 7168  }
  0x13   : > { %v272_v2 = vld [vmem:[%s250_s26] sm:$0x3]  ;;  %v273_v3 = vunpack.c.l.bf16 %v271_v1  ;;  %vm359_vm5 = vcmask 11264  }
  0x14   : > { %v274_v4 = vunpack.c.l.bf16 %v272_v2  ;;  %v286_v12 = vld [vmem:[%s551_s3] sm:$0x3] }
  0x15   : > { %v284_v13 = vld [vmem:[%s256_s6] sm:$0xf] }
  0x16   : > { %v275_v5 = vadd.f32 %v274_v4, %v273_v3  ;;  %v285_v15 = vunpack.c.l.bf16 %v284_v13 }
  0x18   : > { %277 = vst [vmem:[#allocation1] ss:$4 sm:$0xff] %v275_v5  ;;  %v332_v34 = vld [vmem:[%s553_s5] sm:$0xf] }
  0x1f   : > { %v278_v6 = vld.sshfl [vmem:[#allocation1] sm:$0xff pattern:$0x73625140]  ;;  %v279_v7 = vld.sshfl [vmem:[#allocation1 + $0x8] sm:$0xff pattern:$0x73625140] }
  0x20   : > { %v282_v8 = vpack.c.bf16 %v278_v6, %v278_v6  ;;  %v283_v9 = vpack.c.bf16 %v279_v7, %v279_v7 }
  0x22   : > { %v293_v10 = vsel %vm291_vm1, %v282_v8, 0  ;;  %v296_v11 = vsel %vm291_vm1, %v283_v9, 0 }
  0x23   : > { %305 = vmatpush.bf16.msra.mxu0 %v293_v10  ;;  %318 = vmatpush.bf16.msra.mxu1 %v296_v11 }
  0x26   : > { %453 = vmatmul.msk.bf16.vlgmr.msra.gmra.mxu0 %vm287_vm2, %v286_v12  ;;  %454 = vmatmul.msk.bf16.vlgmr.msra.gmra.mxu1 %vm287_vm2, %v286_v12 }
  0xa3   : > { %v307_v14 = vpop.f32.mrf.mxu0  ;;  %v320_v16 = vpop.f32.mrf.mxu1 }
  0xa4   : > { %v326_v17 = vrot.slane %v320_v16, 4 }
  0xa6   : > { %v328_v18 = vsel %vm327_vm3, %v307_v14, %v326_v17 }
  0xa7   : > { %v330_v19 = vadd.f32 %v328_v18, %v285_v15 }
  0xa9   : > { %331 = vst [vmem:[%s525_s9] sm:$0xff] %v330_v19  ;;  %v344_v22 = vmul.f32 %v330_v19, %v330_v19 }
  0xaa   : > { %334 = vst [vmem:[#allocation1] ss:$2 sm:$0xff] %v330_v19 }
  0xab   : > { %v309_v20 = vpop.f32.mrf.mxu0  ;;  %v322_v21 = vpop.f32.mrf.mxu1 }
  0xb1   : > { %v335_v23 = vld.sshfl [vmem:[#allocation1] sm:$0xff pattern:$0x75316420]  ;;  %v336_v24 = vld.sshfl [vmem:[#allocation1 + $0x8] sm:$0xff pattern:$0x75316420] }
  0xb2   : > { %v339_v25 = vsel %vm327_vm3, %v335_v23, 0.0  ;;  %v340_v26 = vsel %vm327_vm3, %v336_v24, 0.0  ;;  %346 = vst [vmem:[#allocation1] ss:$2 sm:$0xff] %v344_v22 }
  0xb3   : > { %v341_v27 = vadd.f32 %v340_v26, %v339_v25 }
  0xb5   : > { %342 = vadd.xlane.f32.xlu0 %v341_v27 }
  0xb9   : > { %v347_v28 = vld.sshfl [vmem:[#allocation1] sm:$0xff pattern:$0x75316420]  ;;  %v348_v29 = vld.sshfl [vmem:[#allocation1 + $0x8] sm:$0xff pattern:$0x75316420] }
  0xba   : > { %v351_v30 = vsel %vm327_vm3, %v347_v28, 0.0  ;;  %v352_v31 = vsel %vm327_vm3, %v348_v29, 0.0 }
  0xbb   : > { %v353_v32 = vadd.f32 %v352_v31, %v351_v30 }
  0xbd   : > { %354 = vadd.xlane.f32.xlu0 %v353_v32 }
 0x128   : > { %v343_v33 = vpop.xlane.xlu0 %342 }
 0x130   : > { %v355_v35 = vpop.xlane.xlu0 %354 }
 0x131   : > { %v357_v36 = vsel %vm356_vm4, %v343_v33, %v355_v35 }
 0x132   : > { %v358_v37 = vadd.f32 %v357_v36, %v332_v34 }
 0x134   : > { %360 = vst.msk [vmem:[%s553_s5] sm:$0xf] %vm359_vm5, %v358_v37 }
 0x135 PF: > { %s16_s18 = sadd.s32 1, %s472_s18  }
 0x136   : > { %p13_p5 = scmp.ge.s32.totalorder %s16_s18, 4  }
 0x138   :  { %15 = sbr.rel (!%p13_p5) target bundleno = 1 (0x1), region = 84 }

// kernel: ffc_resnet_block.19
= control target key start
LH: loop header
LB: loop body
LE: loop exit
PB: predicated region body
PF: predicated region fallthrough
CT: control target
= control target key end

     0   :  { %s751_s13 = smov 0   ;;  %s797_s0 = inlined_call_operand.vmem [shape: f32[4,512], index: 0, kind: input, shape index: {}]   ;;  %s798_s1 = inlined_call_operand.vmem [shape: f32[2,512], index: 1, kind: input, shape index: {}]   ;;  %s799_s2 = inlined_call_operand.vmem [shape: f32[4,2], index: 2, kind: input, shape index: {}]   ;;  %s800_s3 = inlined_call_operand.vmem [shape: f32[2,2], index: 3, kind: input, shape index: {}]   ;;  %s801_s4 = inlined_call_operand.vmem [shape: f32[4,1], index: 4, kind: input, shape index: {}]   ;;  %s802_s5 = inlined_call_operand.vmem [shape: f32[4,1], index: 5, kind: input, shape index: {}]   ;;  %s803_s6 = inlined_call_operand.vmem [shape: f32[2,1], index: 6, kind: input, shape index: {}]   ;;  %s804_s7 = inlined_call_operand.vmem [shape: f32[2,1], index: 7, kind: input, shape index: {}]   ;;  %s805_s8 = inlined_call_operand.vmem [shape: f32[4,512], index: 8, kind: input, shape index: {}]   ;;  %s806_s9 = inlined_call_operand.vmem [shape: f32[4,512], index: 9, kind: output, shape index: {0}]   ;;  %s807_s10 = inlined_call_operand.vmem [shape: bf16[2,512], index: 10, kind: output, shape index: {1}]  }
   0x1 LB: > { %s647_s14 = sadd.s32 4294967295, %s689_s13   ;;  %p651_p0 = scmp.ge.s32.totalorder %s689_s13, 1  ;;  %s689_s13 = sphi %s751_s13, %s21_s13  }
   0x2   : > { %p338_p1 = scmp.lt.s32.totalorder %s689_s13, 3 }
   0x4   : > { %p339_p2 = pnand %p651_p0, %p338_p1 }
   0x5   : > { %s691_s19 = smov (!%p339_p2), 1   ;;  %s692_s20 = smov (!%p339_p2), 127  }
   0x6   : > { %342 = sbr.rel (%p339_p2) target bundleno = 408 (0x198), region = 56  ;;  %s652_s29 = sshll.u32 (!%p339_p2), %s647_s14, 1 }
   0x7   : > { %p391_p3 = scmp.lt.s32.totalorder (!%p339_p2), %s652_s29, 3 }
   0xb   : > { %v448_v0 = vld [vmem:[%s800_s3] sm:$0x3]  ;;  %v693_v28 = vmov 0   ;;  %s809_s29 = smov (!%p391_p3, %s652_s29), 3  ;;  %v694_v41 = vmov 269488144  }
   0xc   : > { %v451_v1 = vmul.f32 0.001953125, %v448_v0  ;;  %v419_v2 = vld [vmem:[%s799_s2] sm:$0xf]  ;;  %676 = vset.pattern.permute.xlu2 %v693_v28  ;;  %677 = vset.pattern.permute.xlu0 %v693_v28  ;;  %v508_v42 = vunpack.c.l.s4 %v694_v41  ;;  %s655_s30 = sshll.u32 %s809_s29, 1  ;;  %vm533_vm6 = vcmask 1040384   ;;  %s417_s17 = scalar_lea.vmem %s807_s10, %s809_s29 }
   0xd   : > { %v422_v4 = vmul.f32 0.001953125, %v419_v2  ;;  %678 = vset.pattern.permute.xlu1 %v693_v28  ;;  %v449_v29 = vld [vmem:[%s803_s6] sm:$0x3]  ;;  %s400_s15 = scalar_lea.vmem %s798_s1, %s655_s30  ;;  %v695_v56 = vmov 839922192   ;;  %s653_s18 = sshll.u32 %s809_s29, 2 }
   0xe   : > { %v452_v3 = vmul.f32 %v451_v1, %v451_v1  ;;  %v420_v33 = vld [vmem:[%s801_s4] sm:$0xf]  ;;  %v509_v44 = vunpack.c.0.s8 %v508_v42  ;;  %v483_v57 = vunpack.c.l.s4 %v695_v56  ;;  %s394_s21 = scalar_lea.vmem %s797_s0, %s653_s18  ;;  %s406_s24 = scalar_lea.vmem %s805_s8, %s653_s18 }
   0xf   : > { %v423_v5 = vmul.f32 %v422_v4, %v422_v4  ;;  %v450_v34 = vld [vmem:[%s804_s7] sm:$0x3]  ;;  %s412_s27 = scalar_lea.vmem %s806_s9, %s653_s18 }
  0x10   : > { %454 = vrot.lane.b32.xlu0 %v452_v3, %s691_s19  ;;  %v421_v38 = vld [vmem:[%s802_s5] sm:$0xf]  ;;  %v484_v59 = vunpack.c.0.s8 %v483_v57 }
  0x11   : > { %v502_v46 = vld [vmem:[%s400_s15] sm:$0xf] }
  0x12   : > { %v477_v62 = vld [vmem:[%s394_s21] sm:$0xff] }
  0x13   : > { %v499_v3 = vld [vmem:[%s406_s24] sm:$0xff] }
  0x18   : > { %425 = vrot.lane.b32.xlu0 %v423_v5, %s691_s19 }
  0x82   : > { %v455_v6 = vpop.permute.xlu0 %454 }
  0x83   : > { %v457_v7 = vsub.f32 %v451_v1, %v455_v6 }
  0x85   : > { %v458_v8 = vmax.f32 %v457_v7, 0.0 }
  0x87   : > { %v459_v9 = vadd.f32 1e-05, %v458_v8 }
  0x89   : > { %679 = vrsqrt.f32 %v459_v9  ;;  %vm466_vm1 = vweird.f32 %v459_v9 }
  0x8a   : > { %v426_v10 = vpop.permute.xlu0 %425 }
  0x8b   : > { %v428_v11 = vsub.f32 %v422_v4, %v426_v10 }
  0x8d   : > { %v429_v12 = vmax.f32 %v428_v11, 0.0 }
  0x8f   : > { %v680_v13 = vpop.eup %679  ;;  %v430_v14 = vadd.f32 1e-05, %v429_v12 }
  0x90   : > { %v461_v15 = vmul.f32 %v680_v13, %v459_v9  ;;  %vm467_vm0 = vweird.f32 %v680_v13 }
  0x91   : > { %681 = vrsqrt.f32 %v430_v14  ;;  %vm468_vm2 = vmor %vm466_vm1, %vm467_vm0  ;;  %vm437_vm4 = vweird.f32 %v430_v14 }
  0x92   : > { %v462_v16 = vmul.f32 %v680_v13, %v461_v15 }
  0x94   : > { %v463_v17 = vmul.f32 0.5, %v462_v16 }
  0x96   : > { %v464_v18 = vsub.f32 1.5, %v463_v17 }
  0x97   : > { %v682_v19 = vpop.eup %681 }
  0x98   : > { %v432_v20 = vmul.f32 %v682_v19, %v430_v14  ;;  %v465_v21 = vmul.f32 %v680_v13, %v464_v18  ;;  %vm438_vm3 = vweird.f32 %v682_v19 }
  0x99   : > { %vm439_vm5 = vmor %vm437_vm4, %vm438_vm3 }
  0x9a   : > { %v433_v22 = vmul.f32 %v682_v19, %v432_v20  ;;  %v469_v23 = vsel %vm468_vm2, %v680_v13, %v465_v21 }
  0x9b   : > { %471 = vrot.lane.b32.xlu1 %v469_v23, %s692_s20 }
  0x9c   : > { %v434_v24 = vmul.f32 0.5, %v433_v22 }
  0x9e   : > { %v435_v25 = vsub.f32 1.5, %v434_v24 }
  0xa0   : > { %v436_v26 = vmul.f32 %v682_v19, %v435_v25 }
  0xa2   : > { %v440_v27 = vsel %vm439_vm5, %v682_v19, %v436_v26 }
  0xa3   : > { %442 = vrot.lane.b32.xlu1 %v440_v27, %s692_s20 }
 0x10d   : > { %v472_v30 = vpop.permute.xlu1 %471 }
 0x10e   : > { %v474_v31 = vmul.f32 %v472_v30, %v449_v29 }
 0x110   : > { %505 = vperm.xlu2 %676, %v474_v31   ;;  %v475_v32 = vmul.f32 %v474_v31, %v451_v1 }
 0x112   : > { %v476_v37 = vsub.f32 %v450_v34, %v475_v32 }
 0x115   : > { %v443_v35 = vpop.permute.xlu1 %442 }
 0x116   : > { %v445_v36 = vmul.f32 %v443_v35, %v420_v33 }
 0x118   : > { %v446_v39 = vmul.f32 %v445_v36, %v422_v4  ;;  %515 = vperm.xlu2 %676, %v476_v37   ;;  %480 = vperm.xlu0 %677, %v445_v36  }
 0x11a   : > { %v447_v40 = vsub.f32 %v421_v38, %v446_v39 }
 0x11c   : > { %490 = vperm.xlu1 %678, %v447_v40  }
 0x16a   : > { %v506_v43 = vpop.permute.xlu2 %505 }
 0x16b   : > { %v510_v45 = vperm.slane %v506_v43, %v509_v44 }
 0x16d   : > { %v512_v48 = vmul.f32 %v510_v45, %v502_v46 }
 0x172   : > { %v516_v47 = vpop.permute.xlu2 %515 }
 0x173   : > { %v520_v49 = vperm.slane %v516_v47, %v509_v44 }
 0x175   : > { %v522_v50 = vadd.f32 %v520_v49, %v512_v48 }
 0x177   : > { %v523_v51 = vmax.f32 %v522_v50, 0.0 }
 0x179   : > { %525 = vst [vmem:[#allocation1] ss:$4 sm:$0xff] %v523_v51 }
 0x180   : > { %v526_v52 = vld.sshfl [vmem:[#allocation1] sm:$0xff pattern:$0x73625140]  ;;  %v527_v53 = vld.sshfl [vmem:[#allocation1 + $0x8] sm:$0xff pattern:$0x73625140] }
 0x181   : > { %v530_v54 = vpack.c.bf16 %v527_v53, %v526_v52 }
 0x183   : > { %v532_v55 = vrot.slane %v530_v54, 3 }
 0x185   : > { %v536_v58 = vsel %vm533_vm6, %v530_v54, %v532_v55 }
 0x186   : > { %538 = vst [vmem:[%s417_s17] sm:$0x3] %v536_v58 }
 0x18a   : > { %v481_v60 = vpop.permute.xlu0 %480 }
 0x18b   : > { %v485_v61 = vperm.slane %v481_v60, %v484_v59 }
 0x18d   : > { %v487_v0 = vmul.f32 %v485_v61, %v477_v62 }
 0x18e   : > { %v491_v63 = vpop.permute.xlu1 %490 }
 0x18f   : > { %v495_v1 = vperm.slane %v491_v63, %v484_v59 }
 0x191   : > { %v497_v2 = vadd.f32 %v495_v1, %v487_v0 }
 0x193   : > { %v498_v4 = vmax.f32 %v497_v2, 0.0 }
 0x195   : > { %v500_v5 = vadd.f32 %v499_v3, %v498_v4 }
 0x197   : > { %501 = vst [vmem:[%s412_s27] sm:$0xff] %v500_v5 }
 0x198 PF: > { %s21_s13 = sadd.s32 1, %s689_s13  }
 0x199   : > { %p18_p4 = scmp.ge.s32.totalorder %s21_s13, 4  }
 0x19b   :  { %20 = sbr.rel (!%p18_p4) target bundleno = 1 (0x1), region = 104 }

// kernel: ffc_resnet_block.23
= control target key start
LH: loop header
LB: loop body
LE: loop exit
PB: predicated region body
PF: predicated region fallthrough
CT: control target
= control target key end

     0   :  { %s443_s18 = smov 0   ;;  %s474_s0 = inlined_call_operand.vmem [shape: f32[4,512], index: 0, kind: input, shape index: {}]   ;;  %s475_s1 = inlined_call_operand.vmem [shape: f32[4,2], index: 1, kind: input, shape index: {}]   ;;  %s476_s2 = inlined_call_operand.vmem [shape: f32[4,1], index: 2, kind: input, shape index: {}]   ;;  %s477_s3 = inlined_call_operand.vmem [shape: f32[4,1], index: 3, kind: input, shape index: {}]   ;;  %s478_s4 = inlined_call_operand.vmem [shape: f32[4,512], index: 4, kind: input, shape index: {}]   ;;  %s479_s5 = inlined_call_operand.vmem [shape: f32[4,512], index: 5, kind: output, shape index: {}]  }
   0x1 LB: > { %s372_s19 = sadd.s32 4294967295, %s407_s18   ;;  %p376_p0 = scmp.ge.s32.totalorder %s407_s18, 1  ;;  %s407_s18 = sphi %s443_s18, %s15_s18  }
   0x2   : > { %p199_p1 = scmp.lt.s32.totalorder %s407_s18, 3 }
   0x4   : > { %p200_p2 = pnand %p376_p0, %p199_p1 }
   0x5   : > { %s409_s22 = smov (!%p200_p2), 1   ;;  %s410_s23 = smov (!%p200_p2), 127  }
   0x6   : > { %203 = sbr.rel (%p200_p2) target bundleno = 404 (0x194), region = 40  ;;  %s377_s28 = sshll.u32 (!%p200_p2), %s372_s19, 1 }
   0x7   : > { %p233_p3 = scmp.lt.s32.totalorder (!%p200_p2), %s377_s28, 3 }
   0xb   : > { %v250_v0 = vld [vmem:[%s475_s1] sm:$0xf]  ;;  %v411_v14 = vmov 0   ;;  %s481_s28 = smov (!%p233_p3, %s377_s28), 3  ;;  %v412_v21 = vmov 839922192  }
   0xc   : > { %v253_v1 = vmul.f32 0.001953125, %v250_v0  ;;  %397 = vset.pattern.permute.xlu1 %v411_v14  ;;  %398 = vset.pattern.permute.xlu0 %v411_v14  ;;  %v251_v15 = vld [vmem:[%s476_s2] sm:$0xf]  ;;  %v285_v22 = vunpack.c.l.s4 %v412_v21  ;;  %s378_s29 = sshll.u32 %s481_s28, 2 }
   0xd   : > { %v252_v19 = vld [vmem:[%s477_s3] sm:$0xf]  ;;  %s236_s7 = scalar_lea.vmem %s474_s0, %s378_s29  ;;  %s242_s10 = scalar_lea.vmem %s478_s4, %s378_s29 }
   0xe   : > { %v254_v2 = vmul.f32 %v253_v1, %v253_v1  ;;  %v286_v24 = vunpack.c.0.s8 %v285_v22  ;;  %v279_v26 = vld [vmem:[%s236_s7] sm:$0xff]  ;;  %s248_s13 = scalar_lea.vmem %s479_s5, %s378_s29 }
   0xf   : > { %v301_v31 = vld [vmem:[%s242_s10] sm:$0xff] }
  0x10   : > { %256 = vrot.lane.b32.xlu0 %v254_v2, %s409_s22 }
  0x82   : > { %v257_v3 = vpop.permute.xlu0 %256 }
  0x83   : > { %v259_v4 = vsub.f32 %v253_v1, %v257_v3 }
  0x85   : > { %v260_v5 = vmax.f32 %v259_v4, 0.0 }
  0x87   : > { %v261_v6 = vadd.f32 1e-05, %v260_v5 }
  0x89   : > { %399 = vrsqrt.f32 %v261_v6  ;;  %vm268_vm1 = vweird.f32 %v261_v6 }
  0x8f   : > { %v400_v7 = vpop.eup %399 }
  0x90   : > { %v263_v8 = vmul.f32 %v400_v7, %v261_v6  ;;  %vm269_vm0 = vweird.f32 %v400_v7 }
  0x91   : > { %vm270_vm2 = vmor %vm268_vm1, %vm269_vm0 }
  0x92   : > { %v264_v9 = vmul.f32 %v400_v7, %v263_v8 }
  0x94   : > { %v265_v10 = vmul.f32 0.5, %v264_v9 }
  0x96   : > { %v266_v11 = vsub.f32 1.5, %v265_v10 }
  0x98   : > { %v267_v12 = vmul.f32 %v400_v7, %v266_v11 }
  0x9a   : > { %v271_v13 = vsel %vm270_vm2, %v400_v7, %v267_v12 }
  0x9b   : > { %273 = vrot.lane.b32.xlu0 %v271_v13, %s410_s23 }
 0x10d   : > { %v274_v16 = vpop.permute.xlu0 %273 }
 0x10e   : > { %v276_v17 = vmul.f32 %v274_v16, %v251_v15 }
 0x110   : > { %282 = vperm.xlu1 %397, %v276_v17   ;;  %v277_v18 = vmul.f32 %v276_v17, %v253_v1 }
 0x112   : > { %v278_v20 = vsub.f32 %v252_v19, %v277_v18 }
 0x118   : > { %292 = vperm.xlu1 %397, %v278_v20  }
 0x182   : > { %v283_v23 = vpop.permute.xlu1 %282 }
 0x183   : > { %v287_v25 = vperm.slane %v283_v23, %v286_v24 }
 0x185   : > { %v289_v28 = vmul.f32 %v287_v25, %v279_v26 }
 0x18a   : > { %v293_v27 = vpop.permute.xlu1 %292 }
 0x18b   : > { %v297_v29 = vperm.slane %v293_v27, %v286_v24 }
 0x18d   : > { %v299_v30 = vadd.f32 %v297_v29, %v289_v28 }
 0x18f   : > { %v300_v32 = vmax.f32 %v299_v30, 0.0 }
 0x191   : > { %v302_v33 = vadd.f32 %v301_v31, %v300_v32 }
 0x193   : > { %303 = vst [vmem:[%s248_s13] sm:$0xff] %v302_v33 }
 0x194 PF: > { %s15_s18 = sadd.s32 1, %s407_s18  }
 0x195   : > { %p12_p4 = scmp.ge.s32.totalorder %s15_s18, 4  }
 0x197   :  { %14 = sbr.rel (!%p12_p4) target bundleno = 1 (0x1), region = 73 }

</bundles_post_ra>
